<compile_context>
chip_gen: v6e
topology: v6e:2x2x1
jax: 0.10.0
libtpu: 0.0.40
codegen_flags: <defaults>
</compile_context>

<pallas_src>
import functools

import jax
import jax.numpy as jnp
from jax import lax
from jax.experimental import pallas as pl
from jax.experimental.pallas import tpu as pltpu

BN_EPS = 1e-5
_VMEM_LIMIT = 64 * 1024 * 1024


# ------------------------------ small helpers --------------------------------

def _round_up(x, m):
    return -(-x // m) * m


def _rup_c(c):
    # channel dims -> lane-dense multiples of 128
    return _round_up(max(int(c), 1), 128)


def _choose_row_tile(m):
    # Largest of (512, 256, 128) that keeps row padding <= ~25%; small M is
    # rounded up to the sublane multiple of 8.
    if m < 128:
        return max(8, _round_up(m, 8))
    for cand in (512, 256, 128):
        if cand <= m and (_round_up(m, cand) - m) * 4 <= m:
            return cand
    return 128


def _cparams(sem):
    return pltpu.CompilerParams(dimension_semantics=sem,
                                vmem_limit_bytes=_VMEM_LIMIT)


# ----------------------------- Pallas kernels ---------------------------------

def _mm_bias_kernel(x_ref, w_ref, b_ref, o_ref, acc_ref, *, relu):
    """(tm, tk) @ (tk, tn) with K-grid accumulation, fused bias (+ReLU)."""
    @pl.when(pl.program_id(2) == 0)
    def _init():
        acc_ref[...] = jnp.zeros_like(acc_ref)

    acc_ref[...] += jnp.dot(x_ref[...], w_ref[...],
                            preferred_element_type=jnp.float32)

    @pl.when(pl.program_id(2) == pl.num_programs(2) - 1)
    def _finalize():
        y = acc_ref[...] + b_ref[...]
        if relu:
            y = jnp.maximum(y, 0.0)
        o_ref[...] = y.astype(o_ref.dtype)


def _conv3x3_kernel(xph_ref, w_ref, b_ref, o_ref, *, s, Hout, Wout, relu):
    """Fused-im2col 3x3 conv: 9 shifted (HW, C)@(C, tn) dots on phase planes.

    xph_ref: (1, s*s, Hh, Wh, C)   phase-decomposed, spatially padded image n
    w_ref:   (9, C, tn)            BN-scale-folded taps (kh*3 + kw major)
    b_ref:   (1, tn)
    o_ref:   (1, Hout*Wout, tn)
    """
    C = xph_ref.shape[-1]
    acc = jnp.zeros((Hout * Wout, o_ref.shape[-1]), jnp.float32)
    for kh in range(3):
        for kw in range(3):
            ph = (kh % s) * s + (kw % s)
            dh, dw = kh // s, kw // s
            patch = xph_ref[0, ph, dh:dh + Hout, dw:dw + Wout, :]   # (Hout, Wout, C)
            lhs = patch.reshape(Hout * Wout, C)
            acc = acc + jnp.dot(lhs, w_ref[kh * 3 + kw],
                                preferred_element_type=jnp.float32)
    y = acc + b_ref[...]
    if relu:
        y = jnp.maximum(y, 0.0)
    o_ref[0] = y.astype(o_ref.dtype)


def _final_proj_kernel(a_ref, wc_ref, bc_ref, s_ref, ws_ref, bs_ref, o_ref):
    """branch2c 1x1+BN  +  projection-shortcut 1x1+BN  + add + ReLU, fused."""
    y = jnp.dot(a_ref[...], wc_ref[...], preferred_element_type=jnp.float32) + bc_ref[...]
    y = y + jnp.dot(s_ref[...], ws_ref[...], preferred_element_type=jnp.float32) + bs_ref[...]
    o_ref[...] = jnp.maximum(y, 0.0).astype(o_ref.dtype)


def _final_ident_kernel(a_ref, wc_ref, bc_ref, s_ref, o_ref):
    """branch2c 1x1+BN + identity residual + ReLU, fused."""
    y = jnp.dot(a_ref[...], wc_ref[...], preferred_element_type=jnp.float32) + bc_ref[...]
    o_ref[...] = jnp.maximum(y + s_ref[...].astype(jnp.float32), 0.0).astype(o_ref.dtype)


# ------------------------------ kernel wrappers -------------------------------

def fused_matmul_bias(x2d, w2d, bias, *, relu, out_dtype):
    """y = act(x2d @ w2d + bias); channels already padded to 128 multiples."""
    M, K = x2d.shape
    Co = w2d.shape[1]
    tm = _choose_row_tile(M)
    Mp = _round_up(M, tm)
    if Mp != M:
        x2d = jnp.pad(x2d, ((0, Mp - M), (0, 0)))
    tn = 128
    tk = 512 if K % 512 == 0 else (256 if K % 256 == 0 else 128)
    tk = min(tk, K)
    grid = (Mp // tm, Co // tn, K // tk)

    out = pl.pallas_call(
        functools.partial(_mm_bias_kernel, relu=relu),
        out_shape=jax.ShapeDtypeStruct((Mp, Co), out_dtype),
        grid_spec=pltpu.PrefetchScalarGridSpec(
            num_scalar_prefetch=0,
            grid=grid,
            in_specs=[
                pl.BlockSpec((tm, tk), lambda i, j, k: (i, k)),
                pl.BlockSpec((tk, tn), lambda i, j, k: (k, j)),
                pl.BlockSpec((1, tn), lambda i, j, k: (0, j)),
            ],
            out_specs=pl.BlockSpec((tm, tn), lambda i, j, k: (i, j)),
            scratch_shapes=[pltpu.VMEM((tm, tn), jnp.float32)],
        ),
        compiler_params=_cparams(("parallel", "parallel", "arbitrary")),
    )(x2d, w2d, bias)
    return out[:M]


def fused_conv3x3_bn_act(x_nhwc, w9, bias, *, stride, relu, compute_dtype):
    """3x3 conv (pad 1, stride 1/2) + folded BN + ReLU with im2col done in-kernel.

    x_nhwc: (N, H, W, C)  with C padded to a multiple of 128
    w9:     (9, C, Co_pad) scale-folded weights
    Returns (N, Hout*Wout, Co_pad) and (Hout, Wout).
    """
    N, H, W, C = x_nhwc.shape
    Cop = w9.shape[-1]
    s = stride
    Hout = (H - 1) // s + 1
    Wout = (W - 1) // s + 1
    extra = 2 if s == 1 else 1
    Hh, Wh = Hout + extra, Wout + extra

    # Pad spatially (1 in front; enough behind to make s*Hh / s*Wh) then
    # space-to-depth into s*s phase planes so every in-kernel tap slice is
    # unit-stride.  Total bytes ~= 1x the activation (not 9x).
    xp = jnp.pad(x_nhwc, ((0, 0), (1, s * Hh - 1 - H), (1, s * Wh - 1 - W), (0, 0)))
    xph = xp.reshape(N, Hh, s, Wh, s, C).transpose(0, 2, 4, 1, 3, 5)
    xph = xph.reshape(N, s * s, Hh, Wh, C).astype(compute_dtype)

    tn = 128
    grid = (N, Cop // tn)
    out = pl.pallas_call(
        functools.partial(_conv3x3_kernel, s=s, Hout=Hout, Wout=Wout, relu=relu),
        out_shape=jax.ShapeDtypeStruct((N, Hout * Wout, Cop), compute_dtype),
        grid_spec=pltpu.PrefetchScalarGridSpec(
            num_scalar_prefetch=0,
            grid=grid,
            in_specs=[
                pl.BlockSpec((1, s * s, Hh, Wh, C), lambda n, j: (n, 0, 0, 0, 0)),
                pl.BlockSpec((9, C, tn), lambda n, j: (0, 0, j)),
                pl.BlockSpec((1, tn), lambda n, j: (0, j)),
            ],
            out_specs=pl.BlockSpec((1, Hout * Wout, tn), lambda n, j: (n, 0, j)),
        ),
        compiler_params=_cparams(("parallel", "parallel")),
    )(xph, w9, bias)
    return out, (Hout, Wout)


def fused_final_projection(a2d, wc, bc, s2d, ws, bs, *, out_dtype):
    """relu((a2d @ wc + bc) + (s2d @ ws + bs)) — branch2c + conv shortcut fused."""
    M, K1 = a2d.shape
    K2 = s2d.shape[1]
    Co = wc.shape[1]
    tm = _choose_row_tile(M)
    Mp = _round_up(M, tm)
    if Mp != M:
        a2d = jnp.pad(a2d, ((0, Mp - M), (0, 0)))
        s2d = jnp.pad(s2d, ((0, Mp - M), (0, 0)))
    tn = 128
    grid = (Mp // tm, Co // tn)
    # TODO(synk): for very large K (>~4k) add a K reduction axis here as well.
    out = pl.pallas_call(
        _final_proj_kernel,
        out_shape=jax.ShapeDtypeStruct((Mp, Co), out_dtype),
        grid_spec=pltpu.PrefetchScalarGridSpec(
            num_scalar_prefetch=0,
            grid=grid,
            in_specs=[
                pl.BlockSpec((tm, K1), lambda i, j: (i, 0)),
                pl.BlockSpec((K1, tn), lambda i, j: (0, j)),
                pl.BlockSpec((1, tn), lambda i, j: (0, j)),
                pl.BlockSpec((tm, K2), lambda i, j: (i, 0)),
                pl.BlockSpec((K2, tn), lambda i, j: (0, j)),
                pl.BlockSpec((1, tn), lambda i, j: (0, j)),
            ],
            out_specs=pl.BlockSpec((tm, tn), lambda i, j: (i, j)),
        ),
        compiler_params=_cparams(("parallel", "parallel")),
    )(a2d, wc, bc, s2d, ws, bs)
    return out[:M]


def fused_final_identity(a2d, wc, bc, s2d, *, out_dtype):
    """relu((a2d @ wc + bc) + s2d) — branch2c + identity residual fused."""
    M, K1 = a2d.shape
    Co = wc.shape[1]
    tm = _choose_row_tile(M)
    Mp = _round_up(M, tm)
    if Mp != M:
        a2d = jnp.pad(a2d, ((0, Mp - M), (0, 0)))
        s2d = jnp.pad(s2d, ((0, Mp - M), (0, 0)))
    tn = 128
    grid = (Mp // tm, Co // tn)
    out = pl.pallas_call(
        _final_ident_kernel,
        out_shape=jax.ShapeDtypeStruct((Mp, Co), out_dtype),
        grid_spec=pltpu.PrefetchScalarGridSpec(
            num_scalar_prefetch=0,
            grid=grid,
            in_specs=[
                pl.BlockSpec((tm, K1), lambda i, j: (i, 0)),
                pl.BlockSpec((K1, tn), lambda i, j: (0, j)),
                pl.BlockSpec((1, tn), lambda i, j: (0, j)),
                pl.BlockSpec((tm, tn), lambda i, j: (i, j)),
            ],
            out_specs=pl.BlockSpec((tm, tn), lambda i, j: (i, j)),
        ),
        compiler_params=_cparams(("parallel", "parallel")),
    )(a2d, wc, bc, s2d)
    return out[:M]


# ------------------------- host-side weight folding ---------------------------

def _bn_affine(bn):
    gamma, beta, mean, var = bn
    scale = gamma / jnp.sqrt(var + BN_EPS)
    bias = beta - mean * scale
    return scale, bias


def fold_conv_bn_1x1(w_oihw, bn, k_pad, co_pad, compute_dtype):
    # (Cout, Cin, 1, 1) + BN -> (Cin_pad, Cout_pad) with scale folded, f32 bias.
    co, ci = w_oihw.shape[:2]
    scale, bias = _bn_affine(bn)
    wmat = jnp.transpose(w_oihw[:, :, 0, 0], (1, 0)) * scale[None, :]
    wmat = jnp.pad(wmat, ((0, k_pad - ci), (0, co_pad - co))).astype(compute_dtype)
    bias = jnp.pad(bias, (0, co_pad - co)).reshape(1, -1).astype(jnp.float32)
    return wmat, bias


def fold_conv_bn_3x3(w_oihw, bn, ci_pad, co_pad, compute_dtype):
    # (Cout, Cin, 3, 3) + BN -> (9, Cin_pad, Cout_pad), taps ordered kh*3 + kw.
    co, ci = w_oihw.shape[:2]
    scale, bias = _bn_affine(bn)
    w = jnp.transpose(w_oihw, (2, 3, 1, 0)) * scale[None, None, None, :]
    w = jnp.pad(w, ((0, 0), (0, 0), (0, ci_pad - ci), (0, co_pad - co)))
    w = w.reshape(9, ci_pad, co_pad).astype(compute_dtype)
    bias = jnp.pad(bias, (0, co_pad - co)).reshape(1, -1).astype(jnp.float32)
    return w, bias


def _avg_pool_2x2_ceil(x_nhwc):
    N, H, W, C = x_nhwc.shape
    if H % 2 or W % 2:
        # TODO(synk): odd spatial sizes with ceil_mode edge windows not implemented.
        raise NotImplementedError("variant 'd' avgpool only supports even H/W here")
    return x_nhwc.reshape(N, H // 2, 2, W // 2, 2, C).mean(axis=(2, 4))


# ------------------------------- forward pass ---------------------------------

def bottleneck_forward(x_nchw, params, *, stride, shortcut, variant='b',
                       act='relu', compute_dtype=jnp.float32):
    if act != 'relu':
        # TODO(synk): only ReLU is fused into the kernels (module default).
        raise NotImplementedError("only act='relu' is supported")
    if variant == 'a':
        s1, s2 = stride, 1
    else:
        s1, s2 = 1, stride

    N, Cin, H, W = x_nchw.shape
    width = params['w2a'].shape[0]
    cexp = params['w2c'].shape[0]
    Cin_p, Wid_p, Cexp_p = _rup_c(Cin), _rup_c(width), _rup_c(cexp)

    # NHWC, lane-dense channel padding.  (Interface stays NCHW to match PyTorch.)
    x = jnp.transpose(x_nchw, (0, 2, 3, 1))
    x = jnp.pad(x, ((0, 0), (0, 0), (0, 0), (0, Cin_p - Cin)))
    cx = x.astype(compute_dtype)

    # ---- branch2a: 1x1 conv (+folded BN) + ReLU --------------------------------
    xa = cx if s1 == 1 else cx[:, ::s1, ::s1, :]
    Na, Ha, Wa = xa.shape[0], xa.shape[1], xa.shape[2]
    w2a, b2a = fold_conv_bn_1x1(params['w2a'], params['bn2a'], Cin_p, Wid_p, compute_dtype)
    out_a = fused_matmul_bias(xa.reshape(-1, Cin_p), w2a, b2a,
                              relu=True, out_dtype=compute_dtype)
    out_a = out_a.reshape(Na, Ha, Wa, Wid_p)

    # ---- branch2b: 3x3 conv (+folded BN) + ReLU, im2col fused in-kernel --------
    w2b, b2b = fold_conv_bn_3x3(params['w2b'], params['bn2b'], Wid_p, Wid_p, compute_dtype)
    out_b, (Hb, Wb) = fused_conv3x3_bn_act(out_a, w2b, b2b, stride=s2,
                                           relu=True, compute_dtype=compute_dtype)
    Mo = N * Hb * Wb
    a2d = out_b.reshape(Mo, Wid_p)

    # ---- branch2c + shortcut + add + ReLU, all fused ---------------------------
    w2c, b2c = fold_conv_bn_1x1(params['w2c'], params['bn2c'], Wid_p, Cexp_p, compute_dtype)
    if shortcut:
        if stride != 1 or Cin != cexp:
            raise ValueError("identity shortcut requires stride==1 and ch_in == ch_out*expansion")
        s2d = cx.reshape(-1, Cin_p)   # Cin_p == Cexp_p
        y2d = fused_final_identity(a2d, w2c, b2c, s2d, out_dtype=jnp.float32)
    else:
        if variant == 'd' and stride == 2:
            xs = _avg_pool_2x2_ceil(cx)
        elif stride > 1:
            xs = cx[:, ::stride, ::stride, :]
        else:
            xs = cx
        ws, bs = fold_conv_bn_1x1(params['w_s'], params['bn_s'], Cin_p, Cexp_p, compute_dtype)
        y2d = fused_final_projection(a2d, w2c, b2c, xs.reshape(-1, Cin_p), ws, bs,
                                     out_dtype=jnp.float32)

    y = y2d[:, :cexp].reshape(N, Hb, Wb, cexp)
    return jnp.transpose(y, (0, 3, 1, 2))   # back to NCHW


# --------------------------------- reference ----------------------------------

def _ref_conv_bn(x, w, bn, stride, pad, relu):
    gamma, beta, mean, var = bn
    y = lax.conv_general_dilated(x, w, (stride, stride), [(pad, pad), (pad, pad)],
                                 dimension_numbers=('NCHW', 'OIHW', 'NCHW'))
    scale = gamma / jnp.sqrt(var + BN_EPS)
    y = y * scale[None, :, None, None] + (beta - mean * scale)[None, :, None, None]
    if relu:
        y = jnp.maximum(y, 0.0)
    return y


def bottleneck_ref(x, params, *, stride, shortcut, variant='b'):
    if variant == 'a':
        s1, s2 = stride, 1
    else:
        s1, s2 = 1, stride
    out = _ref_conv_bn(x, params['w2a'], params['bn2a'], s1, 0, True)
    out = _ref_conv_bn(out, params['w2b'], params['bn2b'], s2, 1, True)
    out = _ref_conv_bn(out, params['w2c'], params['bn2c'], 1, 0, False)
    if shortcut:
        short = x
    else:
        short = _ref_conv_bn(x, params['w_s'], params['bn_s'], stride, 0, False)
    return jnp.maximum(out + short, 0.0)


# ----------------------------------- main --------------------------------------

def make_params(key, ch_in, ch_out, expansion=4):
    width = ch_out
    ch_exp = ch_out * expansion
    keys = jax.random.split(key, 8)

    def bn(k, c):
        k1, k2, k3, k4 = jax.random.split(k, 4)
        gamma = jax.random.uniform(k1, (c,), jnp.float32, 0.5, 1.5)
        beta = 0.1 * jax.random.normal(k2, (c,), jnp.float32)
        mean = 0.1 * jax.random.normal(k3, (c,), jnp.float32)
        var = jax.random.uniform(k4, (c,), jnp.float32, 0.5, 1.5)
        return (gamma, beta, mean, var)

    return {
        'w2a': 0.2 * jax.random.normal(keys[0], (width, ch_in, 1, 1), jnp.float32),
        'bn2a': bn(keys[1], width),
        'w2b': 0.2 * jax.random.normal(keys[2], (width, width, 3, 3), jnp.float32),
        'bn2b': bn(keys[3], width),
        'w2c': 0.2 * jax.random.normal(keys[4], (ch_exp, width, 1, 1), jnp.float32),
        'bn2c': bn(keys[5], ch_exp),
        'w_s': 0.2 * jax.random.normal(keys[6], (ch_exp, ch_in, 1, 1), jnp.float32),
        'bn_s': bn(keys[7], ch_exp),
    }


if __name__ == "__main__":
    key = jax.random.PRNGKey(0)
    kx, kp, kx2, kp2 = jax.random.split(key, 4)

    # Config 1: BottleNeck(ch_in=4, ch_out=4, stride=2, shortcut=False, variant='b')
    N, C_IN, H, W = 2, 4, 16, 16
    CH_OUT, STRIDE, SHORTCUT = 4, 2, False
    x = jax.random.normal(kx, (N, C_IN, H, W), jnp.float32)
    params = make_params(kp, C_IN, CH_OUT)

    fwd = jax.jit(functools.partial(bottleneck_forward, stride=STRIDE,
                                    shortcut=SHORTCUT, variant='b',
                                    compute_dtype=jnp.float32))
    out = jax.block_until_ready(fwd(x, params))
    ref = bottleneck_ref(x, params, stride=STRIDE, shortcut=SHORTCUT, variant='b')
    assert out.shape == ref.shape == (N, CH_OUT * 4, H // STRIDE, W // STRIDE), out.shape
    err = float(jnp.max(jnp.abs(out - ref)))
    assert jnp.allclose(out, ref, atol=1e-4, rtol=1e-4), err

    # Same config with bf16 weights/activations (f32 MXU accumulation).
    fwd_bf16 = jax.jit(functools.partial(bottleneck_forward, stride=STRIDE,
                                         shortcut=SHORTCUT, variant='b',
                                         compute_dtype=jnp.bfloat16))
    out_bf16 = jax.block_until_ready(fwd_bf16(x, params))
    err_bf16 = float(jnp.max(jnp.abs(out_bf16 - ref)))
    assert jnp.allclose(out_bf16, ref, atol=1e-1, rtol=1e-1), err_bf16

    # Config 2: identity-shortcut block (ch_in == ch_out*expansion, stride=1).
    N2, C_IN2, CH_OUT2 = 2, 16, 4
    x2 = jax.random.normal(kx2, (N2, C_IN2, H, W), jnp.float32)
    params2 = make_params(kp2, C_IN2, CH_OUT2)
    fwd2 = jax.jit(functools.partial(bottleneck_forward, stride=1,
                                     shortcut=True, variant='b',
                                     compute_dtype=jnp.float32))
    out2 = jax.block_until_ready(fwd2(x2, params2))
    ref2 = bottleneck_ref(x2, params2, stride=1, shortcut=True, variant='b')
    assert out2.shape == ref2.shape == (N2, CH_OUT2 * 4, H, W), out2.shape
    err2 = float(jnp.max(jnp.abs(out2 - ref2)))
    assert jnp.allclose(out2, ref2, atol=1e-4, rtol=1e-4), err2

    print("KERNEL_OK")
</pallas_src>

<mosaic_0001>
module attributes {stable_mosaic.version = 11 : i64} {
  func.func @_mm_bias_kernel(%arg0: i32, %arg1: i32, %arg2: i32, %arg3: memref<512x128xf32, #tpu.memory_space<vmem>>, %arg4: memref<128x128xf32, #tpu.memory_space<vmem>>, %arg5: memref<1x128xf32, #tpu.memory_space<vmem>>, %arg6: memref<512x128xf32, #tpu.memory_space<vmem>>, %arg7: memref<512x128xf32, #tpu.memory_space<vmem>>) attributes {dimension_semantics = [#tpu.dimension_semantics<parallel>, #tpu.dimension_semantics<parallel>, #tpu.dimension_semantics<arbitrary>], iteration_bounds = array<i64: 1, 1, 1>, scalar_prefetch = 0 : i64, scratch_operands = 1 : i64, tpu.core_type = #tpu.core_type<tc>, window_params = [{transform_indices = @transform_0, window_bounds = array<i64: 512, 128>}, {transform_indices = @transform_1, window_bounds = array<i64: 128, 128>}, {transform_indices = @transform_2, window_bounds = array<i64: 1, 128>}, {transform_indices = @transform_3, window_bounds = array<i64: 512, 128>}]} {
    %c0_i32 = arith.constant 0 : i32
    %0 = arith.cmpi eq, %arg2, %c0_i32 : i32
    %1 = arith.extui %0 : i1 to i32
    %c0_i32_0 = arith.constant 0 : i32
    %2 = arith.cmpi ne, %1, %c0_i32_0 : i32
    scf.if %2 {
      %cst_10 = arith.constant 0.000000e+00 : f32
      %12 = vector.broadcast %cst_10 : f32 to vector<512x128xf32>
      %c0_11 = arith.constant 0 : index
      %c0_12 = arith.constant 0 : index
      %13 = vector.load %arg7[%c0_11, %c0_12] : memref<512x128xf32, #tpu.memory_space<vmem>>, vector<512x128xf32>
      tpu.vector_store %arg7[%c0_11, %c0_12], %12 {strides = array<i32>} : memref<512x128xf32, #tpu.memory_space<vmem>>, vector<512x128xf32>,
    } else {
    }
    %c0 = arith.constant 0 : index
    %c0_1 = arith.constant 0 : index
    %3 = vector.load %arg7[%c0, %c0_1] : memref<512x128xf32, #tpu.memory_space<vmem>>, vector<512x128xf32>
    %c0_2 = arith.constant 0 : index
    %c0_3 = arith.constant 0 : index
    %4 = vector.load %arg3[%c0_2, %c0_3] : memref<512x128xf32, #tpu.memory_space<vmem>>, vector<512x128xf32>
    %c0_4 = arith.constant 0 : index
    %c0_5 = arith.constant 0 : index
    %5 = vector.load %arg4[%c0_4, %c0_5] : memref<128x128xf32, #tpu.memory_space<vmem>>, vector<128x128xf32>
    %cst = arith.constant dense<0.000000e+00> : vector<512x128xf32>
    %6 = tpu.matmul %4, %5, %cst {dimension_numbers = #tpu.dot_dimension_numbers<[1], [0], [0], [1], [0, 0, 1, 1], [], []>} : vector<512x128xf32>, vector<128x128xf32>, vector<512x128xf32> -> vector<512x128xf32>
    %7 = arith.addf %3, %6 : vector<512x128xf32>
    %c0_6 = arith.constant 0 : index
    %c0_7 = arith.constant 0 : index
    %8 = vector.load %arg7[%c0_6, %c0_7] : memref<512x128xf32, #tpu.memory_space<vmem>>, vector<512x128xf32>
    tpu.vector_store %arg7[%c0_6, %c0_7], %7 {strides = array<i32>} : memref<512x128xf32, #tpu.memory_space<vmem>>, vector<512x128xf32>,
    %c0_i32_8 = arith.constant 0 : i32
    %9 = arith.cmpi eq, %arg2, %c0_i32_8 : i32
    %10 = arith.extui %9 : i1 to i32
    %c0_i32_9 = arith.constant 0 : i32
    %11 = arith.cmpi ne, %10, %c0_i32_9 : i32
    scf.if %11 {
      %c0_10 = arith.constant 0 : index
      %c0_11 = arith.constant 0 : index
      %12 = vector.load %arg7[%c0_10, %c0_11] : memref<512x128xf32, #tpu.memory_space<vmem>>, vector<512x128xf32>
      %c0_12 = arith.constant 0 : index
      %c0_13 = arith.constant 0 : index
      %13 = vector.load %arg5[%c0_12, %c0_13] : memref<1x128xf32, #tpu.memory_space<vmem>>, vector<1x128xf32>
      %14 = vector.broadcast %13 : vector<1x128xf32> to vector<512x128xf32>
      %15 = arith.addf %12, %14 : vector<512x128xf32>
      %cst_14 = arith.constant 0.000000e+00 : f32
      %16 = vector.broadcast %cst_14 : f32 to vector<512x128xf32>
      %17 = arith.maximumf %15, %16 : vector<512x128xf32>
      %c0_15 = arith.constant 0 : index
      %c0_16 = arith.constant 0 : index
      %18 = vector.load %arg6[%c0_15, %c0_16] : memref<512x128xf32, #tpu.memory_space<vmem>>, vector<512x128xf32>
      tpu.vector_store %arg6[%c0_15, %c0_16], %17 {strides = array<i32>} : memref<512x128xf32, #tpu.memory_space<vmem>>, vector<512x128xf32>,
    } else {
    }
    return
  }
  func.func @transform_0(%arg0: i32, %arg1: i32, %arg2: i32) -> (i32, i32) {
    %c0_i32 = arith.constant 0 : i32
    return %arg0, %arg2 : i32, i32
  }
  func.func @transform_1(%arg0: i32, %arg1: i32, %arg2: i32) -> (i32, i32) {
    %c0_i32 = arith.constant 0 : i32
    return %arg2, %arg1 : i32, i32
  }
  func.func @transform_2(%arg0: i32, %arg1: i32, %arg2: i32) -> (i32, i32) {
    %c0_i32 = arith.constant 0 : i32
    %c0_i32_0 = arith.constant 0 : i32
    return %c0_i32, %arg1 : i32, i32
  }
  func.func @transform_3(%arg0: i32, %arg1: i32, %arg2: i32) -> (i32, i32) {
    %c0_i32 = arith.constant 0 : i32
    return %arg0, %arg1 : i32, i32
  }
}

module attributes {stable_mosaic.version = 11 : i64} {
  func.func @_conv3x3_kernel(%arg0: i32, %arg1: i32, %arg2: memref<1x4x9x9x128xf32, #tpu.memory_space<vmem>>, %arg3: memref<9x128x128xf32, #tpu.memory_space<vmem>>, %arg4: memref<1x128xf32, #tpu.memory_space<vmem>>, %arg5: memref<1x64x128xf32, #tpu.memory_space<vmem>>) attributes {dimension_semantics = [#tpu.dimension_semantics<parallel>, #tpu.dimension_semantics<parallel>], iteration_bounds = array<i64: 2, 1>, scalar_prefetch = 0 : i64, scratch_operands = 0 : i64, tpu.core_type = #tpu.core_type<tc>, window_params = [{transform_indices = @transform_0, window_bounds = array<i64: 1, 4, 9, 9, 128>}, {transform_indices = @transform_1, window_bounds = array<i64: 9, 128, 128>}, {transform_indices = @transform_2, window_bounds = array<i64: 1, 128>}, {transform_indices = @transform_3, window_bounds = array<i64: 1, 64, 128>}]} {
    %cst = arith.constant 0.000000e+00 : f32
    %0 = vector.broadcast %cst : f32 to vector<64x128xf32>
    %c0 = arith.constant 0 : index
    %c0_0 = arith.constant 0 : index
    %c0_1 = arith.constant 0 : index
    %c0_2 = arith.constant 0 : index
    %c0_3 = arith.constant 0 : index
    %1 = vector.load %arg2[%c0, %c0_0, %c0_1, %c0_2, %c0_3] : memref<1x4x9x9x128xf32, #tpu.memory_space<vmem>>, vector<1x1x8x8x128xf32>
    %2 = vector.shape_cast %1 : vector<1x1x8x8x128xf32> to vector<8x8x128xf32>
    %3 = vector.shape_cast %2 : vector<8x8x128xf32> to vector<64x128xf32>
    %c0_4 = arith.constant 0 : index
    %c0_5 = arith.constant 0 : index
    %c0_6 = arith.constant 0 : index
    %4 = vector.load %arg3[%c0_4, %c0_5, %c0_6] : memref<9x128x128xf32, #tpu.memory_space<vmem>>, vector<1x128x128xf32>
    %5 = vector.shape_cast %4 : vector<1x128x128xf32> to vector<128x128xf32>
    %cst_7 = arith.constant dense<0.000000e+00> : vector<64x128xf32>
    %6 = tpu.matmul %3, %5, %cst_7 {dimension_numbers = #tpu.dot_dimension_numbers<[1], [0], [0], [1], [0, 0, 1, 1], [], []>} : vector<64x128xf32>, vector<128x128xf32>, vector<64x128xf32> -> vector<64x128xf32>
    %7 = arith.addf %0, %6 : vector<64x128xf32>
    %c0_8 = arith.constant 0 : index
    %c1 = arith.constant 1 : index
    %c0_9 = arith.constant 0 : index
    %c0_10 = arith.constant 0 : index
    %c0_11 = arith.constant 0 : index
    %8 = vector.load %arg2[%c0_8, %c1, %c0_9, %c0_10, %c0_11] : memref<1x4x9x9x128xf32, #tpu.memory_space<vmem>>, vector<1x1x8x8x128xf32>
    %9 = vector.shape_cast %8 : vector<1x1x8x8x128xf32> to vector<8x8x128xf32>
    %10 = vector.shape_cast %9 : vector<8x8x128xf32> to vector<64x128xf32>
    %c1_12 = arith.constant 1 : index
    %c0_13 = arith.constant 0 : index
    %c0_14 = arith.constant 0 : index
    %11 = vector.load %arg3[%c1_12, %c0_13, %c0_14] : memref<9x128x128xf32, #tpu.memory_space<vmem>>, vector<1x128x128xf32>
    %12 = vector.shape_cast %11 : vector<1x128x128xf32> to vector<128x128xf32>
    %cst_15 = arith.constant dense<0.000000e+00> : vector<64x128xf32>
    %13 = tpu.matmul %10, %12, %cst_15 {dimension_numbers = #tpu.dot_dimension_numbers<[1], [0], [0], [1], [0, 0, 1, 1], [], []>} : vector<64x128xf32>, vector<128x128xf32>, vector<64x128xf32> -> vector<64x128xf32>
    %14 = arith.addf %7, %13 : vector<64x128xf32>
    %c0_16 = arith.constant 0 : index
    %c0_17 = arith.constant 0 : index
    %c0_18 = arith.constant 0 : index
    %c1_19 = arith.constant 1 : index
    %c0_20 = arith.constant 0 : index
    %15 = vector.load %arg2[%c0_16, %c0_17, %c0_18, %c1_19, %c0_20] : memref<1x4x9x9x128xf32, #tpu.memory_space<vmem>>, vector<1x1x8x8x128xf32>
    %16 = vector.shape_cast %15 : vector<1x1x8x8x128xf32> to vector<8x8x128xf32>
    %17 = vector.shape_cast %16 : vector<8x8x128xf32> to vector<64x128xf32>
    %c2 = arith.constant 2 : index
    %c0_21 = arith.constant 0 : index
    %c0_22 = arith.constant 0 : index
    %18 = vector.load %arg3[%c2, %c0_21, %c0_22] : memref<9x128x128xf32, #tpu.memory_space<vmem>>, vector<1x128x128xf32>
    %19 = vector.shape_cast %18 : vector<1x128x128xf32> to vector<128x128xf32>
    %cst_23 = arith.constant dense<0.000000e+00> : vector<64x128xf32>
    %20 = tpu.matmul %17, %19, %cst_23 {dimension_numbers = #tpu.dot_dimension_numbers<[1], [0], [0], [1], [0, 0, 1, 1], [], []>} : vector<64x128xf32>, vector<128x128xf32>, vector<64x128xf32> -> vector<64x128xf32>
    %21 = arith.addf %14, %20 : vector<64x128xf32>
    %c0_24 = arith.constant 0 : index
    %c2_25 = arith.constant 2 : index
    %c0_26 = arith.constant 0 : index
    %c0_27 = arith.constant 0 : index
    %c0_28 = arith.constant 0 : index
    %22 = vector.load %arg2[%c0_24, %c2_25, %c0_26, %c0_27, %c0_28] : memref<1x4x9x9x128xf32, #tpu.memory_space<vmem>>, vector<1x1x8x8x128xf32>
    %23 = vector.shape_cast %22 : vector<1x1x8x8x128xf32> to vector<8x8x128xf32>
    %24 = vector.shape_cast %23 : vector<8x8x128xf32> to vector<64x128xf32>
    %c3 = arith.constant 3 : index
    %c0_29 = arith.constant 0 : index
    %c0_30 = arith.constant 0 : index
    %25 = vector.load %arg3[%c3, %c0_29, %c0_30] : memref<9x128x128xf32, #tpu.memory_space<vmem>>, vector<1x128x128xf32>
    %26 = vector.shape_cast %25 : vector<1x128x128xf32> to vector<128x128xf32>
    %cst_31 = arith.constant dense<0.000000e+00> : vector<64x128xf32>
    %27 = tpu.matmul %24, %26, %cst_31 {dimension_numbers = #tpu.dot_dimension_numbers<[1], [0], [0], [1], [0, 0, 1, 1], [], []>} : vector<64x128xf32>, vector<128x128xf32>, vector<64x128xf32> -> vector<64x128xf32>
    %28 = arith.addf %21, %27 : vector<64x128xf32>
    %c0_32 = arith.constant 0 : index
    %c3_33 = arith.constant 3 : index
    %c0_34 = arith.constant 0 : index
    %c0_35 = arith.constant 0 : index
    %c0_36 = arith.constant 0 : index
    %29 = vector.load %arg2[%c0_32, %c3_33, %c0_34, %c0_35, %c0_36] : memref<1x4x9x9x128xf32, #tpu.memory_space<vmem>>, vector<1x1x8x8x128xf32>
    %30 = vector.shape_cast %29 : vector<1x1x8x8x128xf32> to vector<8x8x128xf32>
    %31 = vector.shape_cast %30 : vector<8x8x128xf32> to vector<64x128xf32>
    %c4 = arith.constant 4 : index
    %c0_37 = arith.constant 0 : index
    %c0_38 = arith.constant 0 : index
    %32 = vector.load %arg3[%c4, %c0_37, %c0_38] : memref<9x128x128xf32, #tpu.memory_space<vmem>>, vector<1x128x128xf32>
    %33 = vector.shape_cast %32 : vector<1x128x128xf32> to vector<128x128xf32>
    %cst_39 = arith.constant dense<0.000000e+00> : vector<64x128xf32>
    %34 = tpu.matmul %31, %33, %cst_39 {dimension_numbers = #tpu.dot_dimension_numbers<[1], [0], [0], [1], [0, 0, 1, 1], [], []>} : vector<64x128xf32>, vector<128x128xf32>, vector<64x128xf32> -> vector<64x128xf32>
    %35 = arith.addf %28, %34 : vector<64x128xf32>
    %c0_40 = arith.constant 0 : index
    %c2_41 = arith.constant 2 : index
    %c0_42 = arith.constant 0 : index
    %c1_43 = arith.constant 1 : index
    %c0_44 = arith.constant 0 : index
    %36 = vector.load %arg2[%c0_40, %c2_41, %c0_42, %c1_43, %c0_44] : memref<1x4x9x9x128xf32, #tpu.memory_space<vmem>>, vector<1x1x8x8x128xf32>
    %37 = vector.shape_cast %36 : vector<1x1x8x8x128xf32> to vector<8x8x128xf32>
    %38 = vector.shape_cast %37 : vector<8x8x128xf32> to vector<64x128xf32>
    %c5 = arith.constant 5 : index
    %c0_45 = arith.constant 0 : index
    %c0_46 = arith.constant 0 : index
    %39 = vector.load %arg3[%c5, %c0_45, %c0_46] : memref<9x128x128xf32, #tpu.memory_space<vmem>>, vector<1x128x128xf32>
    %40 = vector.shape_cast %39 : vector<1x128x128xf32> to vector<128x128xf32>
    %cst_47 = arith.constant dense<0.000000e+00> : vector<64x128xf32>
    %41 = tpu.matmul %38, %40, %cst_47 {dimension_numbers = #tpu.dot_dimension_numbers<[1], [0], [0], [1], [0, 0, 1, 1], [], []>} : vector<64x128xf32>, vector<128x128xf32>, vector<64x128xf32> -> vector<64x128xf32>
    %42 = arith.addf %35, %41 : vector<64x128xf32>
    %c0_48 = arith.constant 0 : index
    %c0_49 = arith.constant 0 : index
    %c1_50 = arith.constant 1 : index
    %c0_51 = arith.constant 0 : index
    %c0_52 = arith.constant 0 : index
    %43 = vector.load %arg2[%c0_48, %c0_49, %c1_50, %c0_51, %c0_52] : memref<1x4x9x9x128xf32, #tpu.memory_space<vmem>>, vector<1x1x8x8x128xf32>
    %44 = vector.shape_cast %43 : vector<1x1x8x8x128xf32> to vector<8x8x128xf32>
    %45 = vector.shape_cast %44 : vector<8x8x128xf32> to vector<64x128xf32>
    %c6 = arith.constant 6 : index
    %c0_53 = arith.constant 0 : index
    %c0_54 = arith.constant 0 : index
    %46 = vector.load %arg3[%c6, %c0_53, %c0_54] : memref<9x128x128xf32, #tpu.memory_space<vmem>>, vector<1x128x128xf32>
    %47 = vector.shape_cast %46 : vector<1x128x128xf32> to vector<128x128xf32>
    %cst_55 = arith.constant dense<0.000000e+00> : vector<64x128xf32>
    %48 = tpu.matmul %45, %47, %cst_55 {dimension_numbers = #tpu.dot_dimension_numbers<[1], [0], [0], [1], [0, 0, 1, 1], [], []>} : vector<64x128xf32>, vector<128x128xf32>, vector<64x128xf32> -> vector<64x128xf32>
    %49 = arith.addf %42, %48 : vector<64x128xf32>
    %c0_56 = arith.constant 0 : index
    %c1_57 = arith.constant 1 : index
    %c1_58 = arith.constant 1 : index
    %c0_59 = arith.constant 0 : index
    %c0_60 = arith.constant 0 : index
    %50 = vector.load %arg2[%c0_56, %c1_57, %c1_58, %c0_59, %c0_60] : memref<1x4x9x9x128xf32, #tpu.memory_space<vmem>>, vector<1x1x8x8x128xf32>
    %51 = vector.shape_cast %50 : vector<1x1x8x8x128xf32> to vector<8x8x128xf32>
    %52 = vector.shape_cast %51 : vector<8x8x128xf32> to vector<64x128xf32>
    %c7 = arith.constant 7 : index
    %c0_61 = arith.constant 0 : index
    %c0_62 = arith.constant 0 : index
    %53 = vector.load %arg3[%c7, %c0_61, %c0_62] : memref<9x128x128xf32, #tpu.memory_space<vmem>>, vector<1x128x128xf32>
    %54 = vector.shape_cast %53 : vector<1x128x128xf32> to vector<128x128xf32>
    %cst_63 = arith.constant dense<0.000000e+00> : vector<64x128xf32>
    %55 = tpu.matmul %52, %54, %cst_63 {dimension_numbers = #tpu.dot_dimension_numbers<[1], [0], [0], [1], [0, 0, 1, 1], [], []>} : vector<64x128xf32>, vector<128x128xf32>, vector<64x128xf32> -> vector<64x128xf32>
    %56 = arith.addf %49, %55 : vector<64x128xf32>
    %c0_64 = arith.constant 0 : index
    %c0_65 = arith.constant 0 : index
    %c1_66 = arith.constant 1 : index
    %c1_67 = arith.constant 1 : index
    %c0_68 = arith.constant 0 : index
    %57 = vector.load %arg2[%c0_64, %c0_65, %c1_66, %c1_67, %c0_68] : memref<1x4x9x9x128xf32, #tpu.memory_space<vmem>>, vector<1x1x8x8x128xf32>
    %58 = vector.shape_cast %57 : vector<1x1x8x8x128xf32> to vector<8x8x128xf32>
    %59 = vector.shape_cast %58 : vector<8x8x128xf32> to vector<64x128xf32>
    %c8 = arith.constant 8 : index
    %c0_69 = arith.constant 0 : index
    %c0_70 = arith.constant 0 : index
    %60 = vector.load %arg3[%c8, %c0_69, %c0_70] : memref<9x128x128xf32, #tpu.memory_space<vmem>>, vector<1x128x128xf32>
    %61 = vector.shape_cast %60 : vector<1x128x128xf32> to vector<128x128xf32>
    %cst_71 = arith.constant dense<0.000000e+00> : vector<64x128xf32>
    %62 = tpu.matmul %59, %61, %cst_71 {dimension_numbers = #tpu.dot_dimension_numbers<[1], [0], [0], [1], [0, 0, 1, 1], [], []>} : vector<64x128xf32>, vector<128x128xf32>, vector<64x128xf32> -> vector<64x128xf32>
    %63 = arith.addf %56, %62 : vector<64x128xf32>
    %c0_72 = arith.constant 0 : index
    %c0_73 = arith.constant 0 : index
    %64 = vector.load %arg4[%c0_72, %c0_73] : memref<1x128xf32, #tpu.memory_space<vmem>>, vector<1x128xf32>
    %65 = vector.broadcast %64 : vector<1x128xf32> to vector<64x128xf32>
    %66 = arith.addf %63, %65 : vector<64x128xf32>
    %cst_74 = arith.constant 0.000000e+00 : f32
    %67 = vector.broadcast %cst_74 : f32 to vector<64x128xf32>
    %68 = arith.maximumf %66, %67 : vector<64x128xf32>
    %c0_75 = arith.constant 0 : index
    %c0_76 = arith.constant 0 : index
    %c0_77 = arith.constant 0 : index
    %69 = vector.load %arg5[%c0_75, %c0_76, %c0_77] : memref<1x64x128xf32, #tpu.memory_space<vmem>>, vector<1x64x128xf32>
    %70 = vector.shape_cast %69 : vector<1x64x128xf32> to vector<64x128xf32>
    %71 = vector.shape_cast %68 : vector<64x128xf32> to vector<1x64x128xf32>
    tpu.vector_store %arg5[%c0_75, %c0_76, %c0_77], %71 {strides = array<i32>} : memref<1x64x128xf32, #tpu.memory_space<vmem>>, vector<1x64x128xf32>,
    return
  }
  func.func @transform_0(%arg0: i32, %arg1: i32) -> (i32, i32, i32, i32, i32) {
    %c0_i32 = arith.constant 0 : i32
    %c0_i32_0 = arith.constant 0 : i32
    %c0_i32_1 = arith.constant 0 : i32
    %c0_i32_2 = arith.constant 0 : i32
    %c0_i32_3 = arith.constant 0 : i32
    return %arg0, %c0_i32, %c0_i32_0, %c0_i32_1, %c0_i32_2 : i32, i32, i32, i32, i32
  }
  func.func @transform_1(%arg0: i32, %arg1: i32) -> (i32, i32, i32) {
    %c0_i32 = arith.constant 0 : i32
    %c0_i32_0 = arith.constant 0 : i32
    %c0_i32_1 = arith.constant 0 : i32
    return %c0_i32, %c0_i32_0, %arg1 : i32, i32, i32
  }
  func.func @transform_2(%arg0: i32, %arg1: i32) -> (i32, i32) {
    %c0_i32 = arith.constant 0 : i32
    %c0_i32_0 = arith.constant 0 : i32
    return %c0_i32, %arg1 : i32, i32
  }
  func.func @transform_3(%arg0: i32, %arg1: i32) -> (i32, i32, i32) {
    %c0_i32 = arith.constant 0 : i32
    %c0_i32_0 = arith.constant 0 : i32
    return %arg0, %c0_i32, %arg1 : i32, i32, i32
  }
}

module attributes {stable_mosaic.version = 11 : i64} {
  func.func @_final_proj_kernel(%arg0: i32, %arg1: i32, %arg2: memref<128x128xf32, #tpu.memory_space<vmem>>, %arg3: memref<128x128xf32, #tpu.memory_space<vmem>>, %arg4: memref<1x128xf32, #tpu.memory_space<vmem>>, %arg5: memref<128x128xf32, #tpu.memory_space<vmem>>, %arg6: memref<128x128xf32, #tpu.memory_space<vmem>>, %arg7: memref<1x128xf32, #tpu.memory_space<vmem>>, %arg8: memref<128x128xf32, #tpu.memory_space<vmem>>) attributes {dimension_semantics = [#tpu.dimension_semantics<parallel>, #tpu.dimension_semantics<parallel>], iteration_bounds = array<i64: 1, 1>, scalar_prefetch = 0 : i64, scratch_operands = 0 : i64, tpu.core_type = #tpu.core_type<tc>, window_params = [{transform_indices = @transform_0, window_bounds = array<i64: 128, 128>}, {transform_indices = @transform_1, window_bounds = array<i64: 128, 128>}, {transform_indices = @transform_2, window_bounds = array<i64: 1, 128>}, {transform_indices = @transform_3, window_bounds = array<i64: 128, 128>}, {transform_indices = @transform_4, window_bounds = array<i64: 128, 128>}, {transform_indices = @transform_5, window_bounds = array<i64: 1, 128>}, {transform_indices = @transform_6, window_bounds = array<i64: 128, 128>}]} {
    %c0 = arith.constant 0 : index
    %c0_0 = arith.constant 0 : index
    %0 = vector.load %arg2[%c0, %c0_0] : memref<128x128xf32, #tpu.memory_space<vmem>>, vector<128x128xf32>
    %c0_1 = arith.constant 0 : index
    %c0_2 = arith.constant 0 : index
    %1 = vector.load %arg3[%c0_1, %c0_2] : memref<128x128xf32, #tpu.memory_space<vmem>>, vector<128x128xf32>
    %cst = arith.constant dense<0.000000e+00> : vector<128x128xf32>
    %2 = tpu.matmul %0, %1, %cst {dimension_numbers = #tpu.dot_dimension_numbers<[1], [0], [0], [1], [0, 0, 1, 1], [], []>} : vector<128x128xf32>, vector<128x128xf32>, vector<128x128xf32> -> vector<128x128xf32>
    %c0_3 = arith.constant 0 : index
    %c0_4 = arith.constant 0 : index
    %3 = vector.load %arg4[%c0_3, %c0_4] : memref<1x128xf32, #tpu.memory_space<vmem>>, vector<1x128xf32>
    %4 = vector.broadcast %3 : vector<1x128xf32> to vector<128x128xf32>
    %5 = arith.addf %2, %4 : vector<128x128xf32>
    %c0_5 = arith.constant 0 : index
    %c0_6 = arith.constant 0 : index
    %6 = vector.load %arg5[%c0_5, %c0_6] : memref<128x128xf32, #tpu.memory_space<vmem>>, vector<128x128xf32>
    %c0_7 = arith.constant 0 : index
    %c0_8 = arith.constant 0 : index
    %7 = vector.load %arg6[%c0_7, %c0_8] : memref<128x128xf32, #tpu.memory_space<vmem>>, vector<128x128xf32>
    %cst_9 = arith.constant dense<0.000000e+00> : vector<128x128xf32>
    %8 = tpu.matmul %6, %7, %cst_9 {dimension_numbers = #tpu.dot_dimension_numbers<[1], [0], [0], [1], [0, 0, 1, 1], [], []>} : vector<128x128xf32>, vector<128x128xf32>, vector<128x128xf32> -> vector<128x128xf32>
    %9 = arith.addf %5, %8 : vector<128x128xf32>
    %c0_10 = arith.constant 0 : index
    %c0_11 = arith.constant 0 : index
    %10 = vector.load %arg7[%c0_10, %c0_11] : memref<1x128xf32, #tpu.memory_space<vmem>>, vector<1x128xf32>
    %11 = vector.broadcast %10 : vector<1x128xf32> to vector<128x128xf32>
    %12 = arith.addf %9, %11 : vector<128x128xf32>
    %cst_12 = arith.constant 0.000000e+00 : f32
    %13 = vector.broadcast %cst_12 : f32 to vector<128x128xf32>
    %14 = arith.maximumf %12, %13 : vector<128x128xf32>
    %c0_13 = arith.constant 0 : index
    %c0_14 = arith.constant 0 : index
    %15 = vector.load %arg8[%c0_13, %c0_14] : memref<128x128xf32, #tpu.memory_space<vmem>>, vector<128x128xf32>
    tpu.vector_store %arg8[%c0_13, %c0_14], %14 {strides = array<i32>} : memref<128x128xf32, #tpu.memory_space<vmem>>, vector<128x128xf32>,
    return
  }
  func.func @transform_0(%arg0: i32, %arg1: i32) -> (i32, i32) {
    %c0_i32 = arith.constant 0 : i32
    %c0_i32_0 = arith.constant 0 : i32
    return %arg0, %c0_i32 : i32, i32
  }
  func.func @transform_1(%arg0: i32, %arg1: i32) -> (i32, i32) {
    %c0_i32 = arith.constant 0 : i32
    %c0_i32_0 = arith.constant 0 : i32
    return %c0_i32, %arg1 : i32, i32
  }
  func.func @transform_2(%arg0: i32, %arg1: i32) -> (i32, i32) {
    %c0_i32 = arith.constant 0 : i32
    %c0_i32_0 = arith.constant 0 : i32
    return %c0_i32, %arg1 : i32, i32
  }
  func.func @transform_3(%arg0: i32, %arg1: i32) -> (i32, i32) {
    %c0_i32 = arith.constant 0 : i32
    %c0_i32_0 = arith.constant 0 : i32
    return %arg0, %c0_i32 : i32, i32
  }
  func.func @transform_4(%arg0: i32, %arg1: i32) -> (i32, i32) {
    %c0_i32 = arith.constant 0 : i32
    %c0_i32_0 = arith.constant 0 : i32
    return %c0_i32, %arg1 : i32, i32
  }
  func.func @transform_5(%arg0: i32, %arg1: i32) -> (i32, i32) {
    %c0_i32 = arith.constant 0 : i32
    %c0_i32_0 = arith.constant 0 : i32
    return %c0_i32, %arg1 : i32, i32
  }
  func.func @transform_6(%arg0: i32, %arg1: i32) -> (i32, i32) {
    %c0_i32 = arith.constant 0 : i32
    return %arg0, %arg1 : i32, i32
  }
}

</mosaic_0001>

<bundles_post_ra>
// kernel: bottleneck_forward.3
= control target key start
LH: loop header
LB: loop body
LE: loop exit
PB: predicated region body
PF: predicated region fallthrough
CT: control target
= control target key end

     0   :  { %s1771_s1 = inlined_call_operand.vmem [shape: f32[128,128], index: 1, kind: input, shape index: {}]   ;;  %s1772_s0 = inlined_call_operand.vmem [shape: f32[512,128], index: 0, kind: input, shape index: {}]   ;;  %s1773_s2 = inlined_call_operand.vmem [shape: f32[1,128], index: 2, kind: input, shape index: {}]   ;;  %s1774_s3 = inlined_call_operand.vmem [shape: f32[512,128], index: 3, kind: output, shape index: {}]  }
   0x1   :  { %v225_v0 = vld [vmem:[%s1771_s1 + $0x78] sm:$0xff]  ;;  %v224_v1 = vld [vmem:[%s1771_s1 + $0x70] sm:$0xff]  ;;  %v223_v2 = vld [vmem:[%s1771_s1 + $0x68] sm:$0xff] }
   0x2   :  { %1090 = vmatprep.subr.mxu0 %v225_v0  ;;  %1218 = vmatprep.subr.mxu1 %v225_v0  ;;  %v222_v3 = vld [vmem:[%s1771_s1 + $0x60] sm:$0xff]  ;;  %v221_v4 = vld [vmem:[%s1771_s1 + $0x58] sm:$0xff]  ;;  %v220_v5 = vld [vmem:[%s1771_s1 + $0x50] sm:$0xff] }
   0x3   :  { %1091 = vmatpush3.msra.mxu0 %v225_v0  ;;  %1234 = vmatpush3.msra.mxu1 %v225_v0  ;;  %v219_v6 = vld [vmem:[%s1771_s1 + $0x48] sm:$0xff]  ;;  %v218_v7 = vld [vmem:[%s1771_s1 + $0x40] sm:$0xff]  ;;  %v217_v8 = vld [vmem:[%s1771_s1 + $0x38] sm:$0xff] }
   0x4   :  { %1092 = vmatprep.subr.mxu0 %v224_v1  ;;  %1219 = vmatprep.subr.mxu1 %v224_v1  ;;  %v216_v9 = vld [vmem:[%s1771_s1 + $0x30] sm:$0xff]  ;;  %v215_v10 = vld [vmem:[%s1771_s1 + $0x28] sm:$0xff]  ;;  %v214_v11 = vld [vmem:[%s1771_s1 + $0x20] sm:$0xff] }
   0x5   :  { %1093 = vmatpush3.msra.mxu0 %v224_v1  ;;  %1235 = vmatpush3.msra.mxu1 %v224_v1  ;;  %v213_v12 = vld [vmem:[%s1771_s1 + $0x18] sm:$0xff]  ;;  %v212_v13 = vld [vmem:[%s1771_s1 + $0x10] sm:$0xff]  ;;  %v211_v14 = vld [vmem:[%s1771_s1 + $0x8] sm:$0xff] }
   0x6   :  { %1094 = vmatprep.subr.mxu0 %v223_v2  ;;  %1220 = vmatprep.subr.mxu1 %v223_v2  ;;  %v210_v15 = vld [vmem:[%s1771_s1] sm:$0xff]  ;;  %v147_v18 = vld [vmem:[%s1772_s0 + $0x8] sm:$0xff]  ;;  %v148_v20 = vld [vmem:[%s1772_s0 + $0x10] sm:$0xff] }
   0x7   :  { %1095 = vmatpush3.msra.mxu0 %v223_v2  ;;  %1236 = vmatpush3.msra.mxu1 %v223_v2  ;;  %v146_v16 = vld [vmem:[%s1772_s0] sm:$0xff]  ;;  %v179_v19 = vld [vmem:[%s1772_s0 + $0x108] sm:$0xff]  ;;  %v180_v21 = vld [vmem:[%s1772_s0 + $0x110] sm:$0xff] }
   0x8   :  { %1096 = vmatprep.subr.mxu0 %v222_v3  ;;  %1221 = vmatprep.subr.mxu1 %v222_v3  ;;  %v178_v17 = vld [vmem:[%s1772_s0 + $0x100] sm:$0xff]  ;;  %v149_v22 = vld [vmem:[%s1772_s0 + $0x18] sm:$0xff]  ;;  %v151_v26 = vld [vmem:[%s1772_s0 + $0x28] sm:$0xff] }
   0x9   :  { %1097 = vmatpush3.msra.mxu0 %v222_v3  ;;  %1237 = vmatpush3.msra.mxu1 %v222_v3  ;;  %v181_v23 = vld [vmem:[%s1772_s0 + $0x118] sm:$0xff]  ;;  %v150_v24 = vld [vmem:[%s1772_s0 + $0x20] sm:$0xff]  ;;  %v183_v27 = vld [vmem:[%s1772_s0 + $0x128] sm:$0xff] }
   0xa   :  { %1098 = vmatprep.subr.mxu0 %v221_v4  ;;  %1222 = vmatprep.subr.mxu1 %v221_v4  ;;  %v182_v25 = vld [vmem:[%s1772_s0 + $0x120] sm:$0xff]  ;;  %v152_v28 = vld [vmem:[%s1772_s0 + $0x30] sm:$0xff]  ;;  %v153_v30 = vld [vmem:[%s1772_s0 + $0x38] sm:$0xff] }
   0xb   :  { %1099 = vmatpush3.msra.mxu0 %v221_v4  ;;  %1238 = vmatpush3.msra.mxu1 %v221_v4  ;;  %v184_v29 = vld [vmem:[%s1772_s0 + $0x130] sm:$0xff]  ;;  %v185_v31 = vld [vmem:[%s1772_s0 + $0x138] sm:$0xff]  ;;  %v154_v32 = vld [vmem:[%s1772_s0 + $0x40] sm:$0xff] }
   0xc   :  { %1100 = vmatprep.subr.mxu0 %v220_v5  ;;  %1223 = vmatprep.subr.mxu1 %v220_v5  ;;  %v186_v33 = vld [vmem:[%s1772_s0 + $0x140] sm:$0xff]  ;;  %v155_v34 = vld [vmem:[%s1772_s0 + $0x48] sm:$0xff]  ;;  %v156_v36 = vld [vmem:[%s1772_s0 + $0x50] sm:$0xff] }
   0xd   :  { %1101 = vmatpush3.msra.mxu0 %v220_v5  ;;  %1239 = vmatpush3.msra.mxu1 %v220_v5  ;;  %v187_v35 = vld [vmem:[%s1772_s0 + $0x148] sm:$0xff]  ;;  %v188_v37 = vld [vmem:[%s1772_s0 + $0x150] sm:$0xff]  ;;  %v157_v38 = vld [vmem:[%s1772_s0 + $0x58] sm:$0xff] }
   0xe   :  { %1102 = vmatprep.subr.mxu0 %v219_v6  ;;  %1224 = vmatprep.subr.mxu1 %v219_v6  ;;  %v189_v39 = vld [vmem:[%s1772_s0 + $0x158] sm:$0xff]  ;;  %v158_v40 = vld [vmem:[%s1772_s0 + $0x60] sm:$0xff]  ;;  %v159_v42 = vld [vmem:[%s1772_s0 + $0x68] sm:$0xff] }
   0xf   :  { %1103 = vmatpush3.msra.mxu0 %v219_v6  ;;  %1240 = vmatpush3.msra.mxu1 %v219_v6  ;;  %v190_v41 = vld [vmem:[%s1772_s0 + $0x160] sm:$0xff]  ;;  %v191_v43 = vld [vmem:[%s1772_s0 + $0x168] sm:$0xff]  ;;  %v160_v44 = vld [vmem:[%s1772_s0 + $0x70] sm:$0xff] }
  0x10   :  { %1104 = vmatprep.subr.mxu0 %v218_v7  ;;  %1225 = vmatprep.subr.mxu1 %v218_v7  ;;  %v192_v45 = vld [vmem:[%s1772_s0 + $0x170] sm:$0xff]  ;;  %v161_v46 = vld [vmem:[%s1772_s0 + $0x78] sm:$0xff]  ;;  %v162_v48 = vld [vmem:[%s1772_s0 + $0x80] sm:$0xff] }
  0x11   :  { %1105 = vmatpush3.msra.mxu0 %v218_v7  ;;  %1241 = vmatpush3.msra.mxu1 %v218_v7  ;;  %v193_v47 = vld [vmem:[%s1772_s0 + $0x178] sm:$0xff]  ;;  %v194_v49 = vld [vmem:[%s1772_s0 + $0x180] sm:$0xff]  ;;  %v163_v50 = vld [vmem:[%s1772_s0 + $0x88] sm:$0xff] }
  0x12   :  { %1106 = vmatprep.subr.mxu0 %v217_v8  ;;  %1226 = vmatprep.subr.mxu1 %v217_v8  ;;  %v195_v51 = vld [vmem:[%s1772_s0 + $0x188] sm:$0xff]  ;;  %v164_v52 = vld [vmem:[%s1772_s0 + $0x90] sm:$0xff]  ;;  %v165_v54 = vld [vmem:[%s1772_s0 + $0x98] sm:$0xff] }
  0x13   :  { %1107 = vmatpush3.msra.mxu0 %v217_v8  ;;  %1242 = vmatpush3.msra.mxu1 %v217_v8  ;;  %v196_v53 = vld [vmem:[%s1772_s0 + $0x190] sm:$0xff]  ;;  %v197_v55 = vld [vmem:[%s1772_s0 + $0x198] sm:$0xff]  ;;  %v166_v56 = vld [vmem:[%s1772_s0 + $0xa0] sm:$0xff] }
  0x14   :  { %1108 = vmatprep.subr.mxu0 %v216_v9  ;;  %1227 = vmatprep.subr.mxu1 %v216_v9  ;;  %v198_v57 = vld [vmem:[%s1772_s0 + $0x1a0] sm:$0xff]  ;;  %v167_v58 = vld [vmem:[%s1772_s0 + $0xa8] sm:$0xff]  ;;  %v168_v60 = vld [vmem:[%s1772_s0 + $0xb0] sm:$0xff] }
  0x15   :  { %1109 = vmatpush3.msra.mxu0 %v216_v9  ;;  %1243 = vmatpush3.msra.mxu1 %v216_v9  ;;  %v199_v59 = vld [vmem:[%s1772_s0 + $0x1a8] sm:$0xff]  ;;  %v200_v61 = vld [vmem:[%s1772_s0 + $0x1b0] sm:$0xff]  ;;  %v169_v62 = vld [vmem:[%s1772_s0 + $0xb8] sm:$0xff] }
  0x16   :  { %1110 = vmatprep.subr.mxu0 %v215_v10  ;;  %1228 = vmatprep.subr.mxu1 %v215_v10  ;;  %v201_v63 = vld [vmem:[%s1772_s0 + $0x1b8] sm:$0xff]  ;;  %v170_v0 = vld [vmem:[%s1772_s0 + $0xc0] sm:$0xff]  ;;  %v171_v2 = vld [vmem:[%s1772_s0 + $0xc8] sm:$0xff] }
  0x17   :  { %1111 = vmatpush3.msra.mxu0 %v215_v10  ;;  %1244 = vmatpush3.msra.mxu1 %v215_v10  ;;  %v202_v1 = vld [vmem:[%s1772_s0 + $0x1c0] sm:$0xff]  ;;  %v203_v3 = vld [vmem:[%s1772_s0 + $0x1c8] sm:$0xff]  ;;  %v172_v4 = vld [vmem:[%s1772_s0 + $0xd0] sm:$0xff] }
  0x18   :  { %1112 = vmatprep.subr.mxu0 %v214_v11  ;;  %1229 = vmatprep.subr.mxu1 %v214_v11  ;;  %v204_v5 = vld [vmem:[%s1772_s0 + $0x1d0] sm:$0xff]  ;;  %v173_v6 = vld [vmem:[%s1772_s0 + $0xd8] sm:$0xff]  ;;  %v174_v8 = vld [vmem:[%s1772_s0 + $0xe0] sm:$0xff] }
  0x19   :  { %1113 = vmatpush3.msra.mxu0 %v214_v11  ;;  %1245 = vmatpush3.msra.mxu1 %v214_v11  ;;  %v205_v7 = vld [vmem:[%s1772_s0 + $0x1d8] sm:$0xff]  ;;  %v206_v9 = vld [vmem:[%s1772_s0 + $0x1e0] sm:$0xff]  ;;  %v175_v10 = vld [vmem:[%s1772_s0 + $0xe8] sm:$0xff] }
  0x1a   :  { %1114 = vmatprep.subr.mxu0 %v213_v12  ;;  %1230 = vmatprep.subr.mxu1 %v213_v12  ;;  %v207_v11 = vld [vmem:[%s1772_s0 + $0x1e8] sm:$0xff] }
  0x1b   :  { %1115 = vmatpush3.msra.mxu0 %v213_v12  ;;  %1246 = vmatpush3.msra.mxu1 %v213_v12  ;;  %v176_v12 = vld [vmem:[%s1772_s0 + $0xf0] sm:$0xff] }
  0x1c   :  { %1116 = vmatprep.subr.mxu0 %v212_v13  ;;  %1231 = vmatprep.subr.mxu1 %v212_v13 }
  0x1d   :  { %1117 = vmatpush3.msra.mxu0 %v212_v13  ;;  %1247 = vmatpush3.msra.mxu1 %v212_v13  ;;  %v208_v13 = vld [vmem:[%s1772_s0 + $0x1f0] sm:$0xff] }
  0x1e   :  { %1118 = vmatprep.subr.mxu0 %v211_v14  ;;  %1232 = vmatprep.subr.mxu1 %v211_v14 }
  0x1f   :  { %1119 = vmatpush3.msra.mxu0 %v211_v14  ;;  %1248 = vmatpush3.msra.mxu1 %v211_v14  ;;  %v177_v14 = vld [vmem:[%s1772_s0 + $0xf8] sm:$0xff] }
  0x20   :  { %1120 = vmatprep.subr.mxu0 %v210_v15  ;;  %1233 = vmatprep.subr.mxu1 %v210_v15 }
  0x21   :  { %1121 = vmatpush3.msra.mxu0 %v210_v15  ;;  %1249 = vmatpush3.msra.mxu1 %v210_v15  ;;  %v209_v15 = vld [vmem:[%s1772_s0 + $0x1f8] sm:$0xff] }
  0x22   :  { %1122 = vmatprep.mubr.f32.mxu0 %v146_v16  ;;  %1170 = vmatprep.mubr.f32.mxu1 %v178_v17  ;;  %v1513_v16 = vld [vmem:[%s1773_s2] ss:$0 sm:$0xff] }
  0x23   :  { %1123 = vmatmul.mubr.f32.vlgmr.msra.gmra.mxu0 %v147_v18  ;;  %1171 = vmatmul.mubr.f32.vlgmr.msra.gmra.mxu1 %v179_v19 }
  0x24   :  { %1125 = vmatprep.mubr.f32.mxu0 %v148_v20  ;;  %1173 = vmatprep.mubr.f32.mxu1 %v180_v21 }
  0x27   :  { %1126 = vmatmul.mubr.f32.gmra.mxu0 %v149_v22  ;;  %1174 = vmatmul.mubr.f32.gmra.mxu1 %v181_v23 }
  0x28   :  { %1128 = vmatprep.mubr.f32.mxu0 %v150_v24  ;;  %1176 = vmatprep.mubr.f32.mxu1 %v182_v25 }
  0x2b   :  { %1129 = vmatmul.mubr.f32.gmra.mxu0 %v151_v26  ;;  %1177 = vmatmul.mubr.f32.gmra.mxu1 %v183_v27 }
  0x2c   :  { %1131 = vmatprep.mubr.f32.mxu0 %v152_v28  ;;  %1179 = vmatprep.mubr.f32.mxu1 %v184_v29 }
  0x2f   :  { %1132 = vmatmul.mubr.f32.gmra.mxu0 %v153_v30  ;;  %1180 = vmatmul.mubr.f32.gmra.mxu1 %v185_v31 }
  0x30   :  { %1134 = vmatprep.mubr.f32.mxu0 %v154_v32  ;;  %1182 = vmatprep.mubr.f32.mxu1 %v186_v33 }
  0x33   :  { %1135 = vmatmul.mubr.f32.gmra.mxu0 %v155_v34  ;;  %1183 = vmatmul.mubr.f32.gmra.mxu1 %v187_v35 }
  0x34   :  { %1137 = vmatprep.mubr.f32.mxu0 %v156_v36  ;;  %1185 = vmatprep.mubr.f32.mxu1 %v188_v37 }
  0x37   :  { %1138 = vmatmul.mubr.f32.gmra.mxu0 %v157_v38  ;;  %1186 = vmatmul.mubr.f32.gmra.mxu1 %v189_v39 }
  0x38   :  { %1140 = vmatprep.mubr.f32.mxu0 %v158_v40  ;;  %1188 = vmatprep.mubr.f32.mxu1 %v190_v41 }
  0x3b   :  { %1141 = vmatmul.mubr.f32.gmra.mxu0 %v159_v42  ;;  %1189 = vmatmul.mubr.f32.gmra.mxu1 %v191_v43 }
  0x3c   :  { %1143 = vmatprep.mubr.f32.mxu0 %v160_v44  ;;  %1191 = vmatprep.mubr.f32.mxu1 %v192_v45 }
  0x3f   :  { %1144 = vmatmul.mubr.f32.gmra.mxu0 %v161_v46  ;;  %1192 = vmatmul.mubr.f32.gmra.mxu1 %v193_v47 }
  0x40   :  { %1146 = vmatprep.mubr.f32.mxu0 %v162_v48  ;;  %1194 = vmatprep.mubr.f32.mxu1 %v194_v49 }
  0x43   :  { %1147 = vmatmul.mubr.f32.gmra.mxu0 %v163_v50  ;;  %1195 = vmatmul.mubr.f32.gmra.mxu1 %v195_v51 }
  0x44   :  { %1149 = vmatprep.mubr.f32.mxu0 %v164_v52  ;;  %1197 = vmatprep.mubr.f32.mxu1 %v196_v53 }
  0x47   :  { %1150 = vmatmul.mubr.f32.gmra.mxu0 %v165_v54  ;;  %1198 = vmatmul.mubr.f32.gmra.mxu1 %v197_v55 }
  0x48   :  { %1152 = vmatprep.mubr.f32.mxu0 %v166_v56  ;;  %1200 = vmatprep.mubr.f32.mxu1 %v198_v57 }
  0x4b   :  { %1153 = vmatmul.mubr.f32.gmra.mxu0 %v167_v58  ;;  %1201 = vmatmul.mubr.f32.gmra.mxu1 %v199_v59 }
  0x4c   :  { %1155 = vmatprep.mubr.f32.mxu0 %v168_v60  ;;  %1203 = vmatprep.mubr.f32.mxu1 %v200_v61 }
  0x4f   :  { %1156 = vmatmul.mubr.f32.gmra.mxu0 %v169_v62  ;;  %1204 = vmatmul.mubr.f32.gmra.mxu1 %v201_v63 }
  0x50   :  { %1158 = vmatprep.mubr.f32.mxu0 %v170_v0  ;;  %1206 = vmatprep.mubr.f32.mxu1 %v202_v1 }
  0x53   :  { %1159 = vmatmul.mubr.f32.gmra.mxu0 %v171_v2  ;;  %1207 = vmatmul.mubr.f32.gmra.mxu1 %v203_v3 }
  0x54   :  { %1161 = vmatprep.mubr.f32.mxu0 %v172_v4  ;;  %1209 = vmatprep.mubr.f32.mxu1 %v204_v5 }
  0x57   :  { %1162 = vmatmul.mubr.f32.gmra.mxu0 %v173_v6  ;;  %1210 = vmatmul.mubr.f32.gmra.mxu1 %v205_v7 }
  0x58   :  { %1164 = vmatprep.mubr.f32.mxu0 %v174_v8  ;;  %1212 = vmatprep.mubr.f32.mxu1 %v206_v9 }
  0x5b   :  { %1165 = vmatmul.mubr.f32.gmra.mxu0 %v175_v10  ;;  %1213 = vmatmul.mubr.f32.gmra.mxu1 %v207_v11 }
  0x5c   :  { %1167 = vmatprep.mubr.f32.mxu0 %v176_v12  ;;  %1215 = vmatprep.mubr.f32.mxu1 %v208_v13 }
  0x5f   :  { %1168 = vmatmul.mubr.f32.gmra.mxu0 %v177_v14  ;;  %1216 = vmatmul.mubr.f32.gmra.mxu1 %v209_v15 }
  0xe3   :  { %v1124_v17 = vpop.f32.mrf.mxu0  ;;  %v1172_v18 = vpop.f32.mrf.mxu1 }
  0xe4   :  { %v814_v19 = vadd.f32 %v1124_v17, %v1513_v16  ;;  %v846_v20 = vadd.f32 %v1172_v18, %v1513_v16 }
  0xe5   :  { %v292_v21 = vpop.f32.mrf.mxu0  ;;  %v452_v22 = vpop.f32.mrf.mxu1 }
  0xe6   :  { %v878_v23 = vmax.f32 %v814_v19, 0.0  ;;  %v910_v24 = vmax.f32 %v846_v20, 0.0  ;;  %v813_v25 = vadd.f32 %v1513_v16, %v292_v21  ;;  %v845_v26 = vadd.f32 %v1513_v16, %v452_v22 }
  0xe7   :  { %v1127_v27 = vpop.f32.mrf.mxu0  ;;  %v1175_v28 = vpop.f32.mrf.mxu1 }
  0xe8   :  { %942 = vst [vmem:[%s1774_s3 + $0x8] sm:$0xff] %v878_v23  ;;  %974 = vst [vmem:[%s1774_s3 + $0x108] sm:$0xff] %v910_v24  ;;  %v877_v29 = vmax.f32 %v813_v25, 0.0  ;;  %v909_v30 = vmax.f32 %v845_v26, 0.0  ;;  %v816_v31 = vadd.f32 %v1127_v27, %v1513_v16  ;;  %v848_v32 = vadd.f32 %v1175_v28, %v1513_v16 }
  0xe9   :  { %v302_v33 = vpop.f32.mrf.mxu0  ;;  %v462_v34 = vpop.f32.mrf.mxu1 }
  0xea   :  { %941 = vst [vmem:[%s1774_s3] sm:$0xff] %v877_v29  ;;  %973 = vst [vmem:[%s1774_s3 + $0x100] sm:$0xff] %v909_v30  ;;  %v880_v35 = vmax.f32 %v816_v31, 0.0  ;;  %v912_v36 = vmax.f32 %v848_v32, 0.0  ;;  %v815_v37 = vadd.f32 %v1513_v16, %v302_v33  ;;  %v847_v38 = vadd.f32 %v1513_v16, %v462_v34 }
  0xeb   :  { %v1130_v39 = vpop.f32.mrf.mxu0  ;;  %v1178_v40 = vpop.f32.mrf.mxu1 }
  0xec   :  { %944 = vst [vmem:[%s1774_s3 + $0x18] sm:$0xff] %v880_v35  ;;  %976 = vst [vmem:[%s1774_s3 + $0x118] sm:$0xff] %v912_v36  ;;  %v879_v41 = vmax.f32 %v815_v37, 0.0  ;;  %v911_v42 = vmax.f32 %v847_v38, 0.0  ;;  %v818_v43 = vadd.f32 %v1130_v39, %v1513_v16  ;;  %v850_v44 = vadd.f32 %v1178_v40, %v1513_v16 }
  0xed   :  { %v312_v45 = vpop.f32.mrf.mxu0  ;;  %v472_v46 = vpop.f32.mrf.mxu1 }
  0xee   :  { %943 = vst [vmem:[%s1774_s3 + $0x10] sm:$0xff] %v879_v41  ;;  %975 = vst [vmem:[%s1774_s3 + $0x110] sm:$0xff] %v911_v42  ;;  %v882_v47 = vmax.f32 %v818_v43, 0.0  ;;  %v914_v48 = vmax.f32 %v850_v44, 0.0  ;;  %v817_v49 = vadd.f32 %v1513_v16, %v312_v45  ;;  %v849_v50 = vadd.f32 %v1513_v16, %v472_v46 }
  0xef   :  { %v1133_v51 = vpop.f32.mrf.mxu0  ;;  %v1181_v52 = vpop.f32.mrf.mxu1 }
  0xf0   :  { %946 = vst [vmem:[%s1774_s3 + $0x28] sm:$0xff] %v882_v47  ;;  %978 = vst [vmem:[%s1774_s3 + $0x128] sm:$0xff] %v914_v48  ;;  %v881_v53 = vmax.f32 %v817_v49, 0.0  ;;  %v913_v54 = vmax.f32 %v849_v50, 0.0  ;;  %v820_v55 = vadd.f32 %v1133_v51, %v1513_v16  ;;  %v852_v56 = vadd.f32 %v1181_v52, %v1513_v16 }
  0xf1   :  { %v322_v57 = vpop.f32.mrf.mxu0  ;;  %v482_v58 = vpop.f32.mrf.mxu1 }
  0xf2   :  { %945 = vst [vmem:[%s1774_s3 + $0x20] sm:$0xff] %v881_v53  ;;  %977 = vst [vmem:[%s1774_s3 + $0x120] sm:$0xff] %v913_v54  ;;  %v884_v59 = vmax.f32 %v820_v55, 0.0  ;;  %v916_v60 = vmax.f32 %v852_v56, 0.0  ;;  %v819_v61 = vadd.f32 %v1513_v16, %v322_v57  ;;  %v851_v62 = vadd.f32 %v1513_v16, %v482_v58 }
  0xf3   :  { %v1136_v63 = vpop.f32.mrf.mxu0  ;;  %v1184_v0 = vpop.f32.mrf.mxu1 }
  0xf4   :  { %948 = vst [vmem:[%s1774_s3 + $0x38] sm:$0xff] %v884_v59  ;;  %980 = vst [vmem:[%s1774_s3 + $0x138] sm:$0xff] %v916_v60  ;;  %v883_v1 = vmax.f32 %v819_v61, 0.0  ;;  %v915_v2 = vmax.f32 %v851_v62, 0.0  ;;  %v822_v3 = vadd.f32 %v1136_v63, %v1513_v16  ;;  %v854_v4 = vadd.f32 %v1184_v0, %v1513_v16 }
  0xf5   :  { %v332_v5 = vpop.f32.mrf.mxu0  ;;  %v492_v6 = vpop.f32.mrf.mxu1 }
  0xf6   :  { %947 = vst [vmem:[%s1774_s3 + $0x30] sm:$0xff] %v883_v1  ;;  %979 = vst [vmem:[%s1774_s3 + $0x130] sm:$0xff] %v915_v2  ;;  %v886_v7 = vmax.f32 %v822_v3, 0.0  ;;  %v918_v8 = vmax.f32 %v854_v4, 0.0  ;;  %v821_v9 = vadd.f32 %v1513_v16, %v332_v5  ;;  %v853_v10 = vadd.f32 %v1513_v16, %v492_v6 }
  0xf7   :  { %v1139_v11 = vpop.f32.mrf.mxu0  ;;  %v1187_v12 = vpop.f32.mrf.mxu1 }
  0xf8   :  { %950 = vst [vmem:[%s1774_s3 + $0x48] sm:$0xff] %v886_v7  ;;  %982 = vst [vmem:[%s1774_s3 + $0x148] sm:$0xff] %v918_v8  ;;  %v885_v13 = vmax.f32 %v821_v9, 0.0  ;;  %v917_v14 = vmax.f32 %v853_v10, 0.0  ;;  %v824_v15 = vadd.f32 %v1139_v11, %v1513_v16  ;;  %v856_v17 = vadd.f32 %v1187_v12, %v1513_v16 }
  0xf9   :  { %v342_v18 = vpop.f32.mrf.mxu0  ;;  %v502_v19 = vpop.f32.mrf.mxu1 }
  0xfa   :  { %949 = vst [vmem:[%s1774_s3 + $0x40] sm:$0xff] %v885_v13  ;;  %981 = vst [vmem:[%s1774_s3 + $0x140] sm:$0xff] %v917_v14  ;;  %v888_v20 = vmax.f32 %v824_v15, 0.0  ;;  %v920_v21 = vmax.f32 %v856_v17, 0.0  ;;  %v823_v22 = vadd.f32 %v1513_v16, %v342_v18  ;;  %v855_v23 = vadd.f32 %v1513_v16, %v502_v19 }
  0xfb   :  { %v1142_v24 = vpop.f32.mrf.mxu0  ;;  %v1190_v25 = vpop.f32.mrf.mxu1 }
  0xfc   :  { %952 = vst [vmem:[%s1774_s3 + $0x58] sm:$0xff] %v888_v20  ;;  %984 = vst [vmem:[%s1774_s3 + $0x158] sm:$0xff] %v920_v21  ;;  %v887_v26 = vmax.f32 %v823_v22, 0.0  ;;  %v919_v27 = vmax.f32 %v855_v23, 0.0  ;;  %v826_v28 = vadd.f32 %v1142_v24, %v1513_v16  ;;  %v858_v29 = vadd.f32 %v1190_v25, %v1513_v16 }
  0xfd   :  { %v352_v30 = vpop.f32.mrf.mxu0  ;;  %v512_v31 = vpop.f32.mrf.mxu1 }
  0xfe   :  { %951 = vst [vmem:[%s1774_s3 + $0x50] sm:$0xff] %v887_v26  ;;  %983 = vst [vmem:[%s1774_s3 + $0x150] sm:$0xff] %v919_v27  ;;  %v890_v32 = vmax.f32 %v826_v28, 0.0  ;;  %v922_v33 = vmax.f32 %v858_v29, 0.0  ;;  %v825_v34 = vadd.f32 %v1513_v16, %v352_v30  ;;  %v857_v35 = vadd.f32 %v1513_v16, %v512_v31 }
  0xff   :  { %v1145_v36 = vpop.f32.mrf.mxu0  ;;  %v1193_v37 = vpop.f32.mrf.mxu1 }
 0x100   :  { %954 = vst [vmem:[%s1774_s3 + $0x68] sm:$0xff] %v890_v32  ;;  %986 = vst [vmem:[%s1774_s3 + $0x168] sm:$0xff] %v922_v33  ;;  %v889_v38 = vmax.f32 %v825_v34, 0.0  ;;  %v921_v39 = vmax.f32 %v857_v35, 0.0  ;;  %v828_v40 = vadd.f32 %v1145_v36, %v1513_v16  ;;  %v860_v41 = vadd.f32 %v1193_v37, %v1513_v16 }
 0x101   :  { %v362_v42 = vpop.f32.mrf.mxu0  ;;  %v522_v43 = vpop.f32.mrf.mxu1 }
 0x102   :  { %953 = vst [vmem:[%s1774_s3 + $0x60] sm:$0xff] %v889_v38  ;;  %985 = vst [vmem:[%s1774_s3 + $0x160] sm:$0xff] %v921_v39  ;;  %v892_v44 = vmax.f32 %v828_v40, 0.0  ;;  %v924_v45 = vmax.f32 %v860_v41, 0.0  ;;  %v827_v46 = vadd.f32 %v1513_v16, %v362_v42  ;;  %v859_v47 = vadd.f32 %v1513_v16, %v522_v43 }
 0x103   :  { %v1148_v48 = vpop.f32.mrf.mxu0  ;;  %v1196_v49 = vpop.f32.mrf.mxu1 }
 0x104   :  { %956 = vst [vmem:[%s1774_s3 + $0x78] sm:$0xff] %v892_v44  ;;  %988 = vst [vmem:[%s1774_s3 + $0x178] sm:$0xff] %v924_v45  ;;  %v891_v50 = vmax.f32 %v827_v46, 0.0  ;;  %v923_v51 = vmax.f32 %v859_v47, 0.0  ;;  %v830_v52 = vadd.f32 %v1148_v48, %v1513_v16  ;;  %v862_v53 = vadd.f32 %v1196_v49, %v1513_v16 }
 0x105   :  { %v372_v54 = vpop.f32.mrf.mxu0  ;;  %v532_v55 = vpop.f32.mrf.mxu1 }
 0x106   :  { %955 = vst [vmem:[%s1774_s3 + $0x70] sm:$0xff] %v891_v50  ;;  %987 = vst [vmem:[%s1774_s3 + $0x170] sm:$0xff] %v923_v51  ;;  %v894_v56 = vmax.f32 %v830_v52, 0.0  ;;  %v926_v57 = vmax.f32 %v862_v53, 0.0  ;;  %v829_v58 = vadd.f32 %v1513_v16, %v372_v54  ;;  %v861_v59 = vadd.f32 %v1513_v16, %v532_v55 }
 0x107   :  { %v1151_v60 = vpop.f32.mrf.mxu0  ;;  %v1199_v61 = vpop.f32.mrf.mxu1 }
 0x108   :  { %958 = vst [vmem:[%s1774_s3 + $0x88] sm:$0xff] %v894_v56  ;;  %990 = vst [vmem:[%s1774_s3 + $0x188] sm:$0xff] %v926_v57  ;;  %v893_v62 = vmax.f32 %v829_v58, 0.0  ;;  %v925_v63 = vmax.f32 %v861_v59, 0.0  ;;  %v832_v0 = vadd.f32 %v1151_v60, %v1513_v16  ;;  %v864_v1 = vadd.f32 %v1199_v61, %v1513_v16 }
 0x109   :  { %v382_v2 = vpop.f32.mrf.mxu0  ;;  %v542_v3 = vpop.f32.mrf.mxu1 }
 0x10a   :  { %957 = vst [vmem:[%s1774_s3 + $0x80] sm:$0xff] %v893_v62  ;;  %989 = vst [vmem:[%s1774_s3 + $0x180] sm:$0xff] %v925_v63  ;;  %v896_v4 = vmax.f32 %v832_v0, 0.0  ;;  %v928_v5 = vmax.f32 %v864_v1, 0.0  ;;  %v831_v6 = vadd.f32 %v1513_v16, %v382_v2  ;;  %v863_v7 = vadd.f32 %v1513_v16, %v542_v3 }
 0x10b   :  { %v1154_v8 = vpop.f32.mrf.mxu0  ;;  %v1202_v9 = vpop.f32.mrf.mxu1 }
 0x10c   :  { %960 = vst [vmem:[%s1774_s3 + $0x98] sm:$0xff] %v896_v4  ;;  %992 = vst [vmem:[%s1774_s3 + $0x198] sm:$0xff] %v928_v5  ;;  %v895_v10 = vmax.f32 %v831_v6, 0.0  ;;  %v927_v11 = vmax.f32 %v863_v7, 0.0  ;;  %v834_v12 = vadd.f32 %v1154_v8, %v1513_v16  ;;  %v866_v13 = vadd.f32 %v1202_v9, %v1513_v16 }
 0x10d   :  { %v392_v14 = vpop.f32.mrf.mxu0  ;;  %v552_v15 = vpop.f32.mrf.mxu1 }
 0x10e   :  { %959 = vst [vmem:[%s1774_s3 + $0x90] sm:$0xff] %v895_v10  ;;  %991 = vst [vmem:[%s1774_s3 + $0x190] sm:$0xff] %v927_v11  ;;  %v898_v17 = vmax.f32 %v834_v12, 0.0  ;;  %v930_v18 = vmax.f32 %v866_v13, 0.0  ;;  %v833_v19 = vadd.f32 %v1513_v16, %v392_v14  ;;  %v865_v20 = vadd.f32 %v1513_v16, %v552_v15 }
 0x10f   :  { %v1157_v21 = vpop.f32.mrf.mxu0  ;;  %v1205_v22 = vpop.f32.mrf.mxu1 }
 0x110   :  { %962 = vst [vmem:[%s1774_s3 + $0xa8] sm:$0xff] %v898_v17  ;;  %994 = vst [vmem:[%s1774_s3 + $0x1a8] sm:$0xff] %v930_v18  ;;  %v897_v23 = vmax.f32 %v833_v19, 0.0  ;;  %v929_v24 = vmax.f32 %v865_v20, 0.0  ;;  %v836_v25 = vadd.f32 %v1157_v21, %v1513_v16  ;;  %v868_v26 = vadd.f32 %v1205_v22, %v1513_v16 }
 0x111   :  { %v402_v27 = vpop.f32.mrf.mxu0  ;;  %v562_v28 = vpop.f32.mrf.mxu1 }
 0x112   :  { %961 = vst [vmem:[%s1774_s3 + $0xa0] sm:$0xff] %v897_v23  ;;  %993 = vst [vmem:[%s1774_s3 + $0x1a0] sm:$0xff] %v929_v24  ;;  %v900_v29 = vmax.f32 %v836_v25, 0.0  ;;  %v932_v30 = vmax.f32 %v868_v26, 0.0  ;;  %v835_v31 = vadd.f32 %v1513_v16, %v402_v27  ;;  %v867_v32 = vadd.f32 %v1513_v16, %v562_v28 }
 0x113   :  { %v1160_v33 = vpop.f32.mrf.mxu0  ;;  %v1208_v34 = vpop.f32.mrf.mxu1 }
 0x114   :  { %964 = vst [vmem:[%s1774_s3 + $0xb8] sm:$0xff] %v900_v29  ;;  %996 = vst [vmem:[%s1774_s3 + $0x1b8] sm:$0xff] %v932_v30  ;;  %v899_v35 = vmax.f32 %v835_v31, 0.0  ;;  %v931_v36 = vmax.f32 %v867_v32, 0.0  ;;  %v838_v37 = vadd.f32 %v1160_v33, %v1513_v16  ;;  %v870_v38 = vadd.f32 %v1208_v34, %v1513_v16 }
 0x115   :  { %v412_v39 = vpop.f32.mrf.mxu0  ;;  %v572_v40 = vpop.f32.mrf.mxu1 }
 0x116   :  { %963 = vst [vmem:[%s1774_s3 + $0xb0] sm:$0xff] %v899_v35  ;;  %995 = vst [vmem:[%s1774_s3 + $0x1b0] sm:$0xff] %v931_v36  ;;  %v902_v41 = vmax.f32 %v838_v37, 0.0  ;;  %v934_v42 = vmax.f32 %v870_v38, 0.0  ;;  %v837_v43 = vadd.f32 %v1513_v16, %v412_v39  ;;  %v869_v44 = vadd.f32 %v1513_v16, %v572_v40 }
 0x117   :  { %v1163_v45 = vpop.f32.mrf.mxu0  ;;  %v1211_v46 = vpop.f32.mrf.mxu1 }
 0x118   :  { %966 = vst [vmem:[%s1774_s3 + $0xc8] sm:$0xff] %v902_v41  ;;  %998 = vst [vmem:[%s1774_s3 + $0x1c8] sm:$0xff] %v934_v42  ;;  %v901_v47 = vmax.f32 %v837_v43, 0.0  ;;  %v933_v48 = vmax.f32 %v869_v44, 0.0  ;;  %v840_v49 = vadd.f32 %v1163_v45, %v1513_v16  ;;  %v872_v50 = vadd.f32 %v1211_v46, %v1513_v16 }
 0x119   :  { %v422_v51 = vpop.f32.mrf.mxu0  ;;  %v582_v52 = vpop.f32.mrf.mxu1 }
 0x11a   :  { %965 = vst [vmem:[%s1774_s3 + $0xc0] sm:$0xff] %v901_v47  ;;  %997 = vst [vmem:[%s1774_s3 + $0x1c0] sm:$0xff] %v933_v48  ;;  %v904_v53 = vmax.f32 %v840_v49, 0.0  ;;  %v936_v54 = vmax.f32 %v872_v50, 0.0  ;;  %v839_v55 = vadd.f32 %v1513_v16, %v422_v51  ;;  %v871_v56 = vadd.f32 %v1513_v16, %v582_v52 }
 0x11b   :  { %v1166_v57 = vpop.f32.mrf.mxu0  ;;  %v1214_v58 = vpop.f32.mrf.mxu1 }
 0x11c   :  { %968 = vst [vmem:[%s1774_s3 + $0xd8] sm:$0xff] %v904_v53  ;;  %1000 = vst [vmem:[%s1774_s3 + $0x1d8] sm:$0xff] %v936_v54  ;;  %v903_v59 = vmax.f32 %v839_v55, 0.0  ;;  %v935_v60 = vmax.f32 %v871_v56, 0.0  ;;  %v842_v61 = vadd.f32 %v1166_v57, %v1513_v16  ;;  %v874_v62 = vadd.f32 %v1214_v58, %v1513_v16 }
 0x11d   :  { %v432_v63 = vpop.f32.mrf.mxu0  ;;  %v592_v0 = vpop.f32.mrf.mxu1 }
 0x11e   :  { %967 = vst [vmem:[%s1774_s3 + $0xd0] sm:$0xff] %v903_v59  ;;  %999 = vst [vmem:[%s1774_s3 + $0x1d0] sm:$0xff] %v935_v60  ;;  %v906_v1 = vmax.f32 %v842_v61, 0.0  ;;  %v938_v2 = vmax.f32 %v874_v62, 0.0  ;;  %v841_v3 = vadd.f32 %v1513_v16, %v432_v63  ;;  %v873_v4 = vadd.f32 %v1513_v16, %v592_v0 }
 0x11f   :  { %v1169_v5 = vpop.f32.mrf.mxu0  ;;  %v1217_v6 = vpop.f32.mrf.mxu1 }
 0x120   :  { %970 = vst [vmem:[%s1774_s3 + $0xe8] sm:$0xff] %v906_v1  ;;  %1002 = vst [vmem:[%s1774_s3 + $0x1e8] sm:$0xff] %v938_v2  ;;  %v905_v7 = vmax.f32 %v841_v3, 0.0  ;;  %v937_v8 = vmax.f32 %v873_v4, 0.0  ;;  %v844_v9 = vadd.f32 %v1169_v5, %v1513_v16  ;;  %v876_v10 = vadd.f32 %v1217_v6, %v1513_v16 }
 0x121   :  { %v442_v11 = vpop.f32.mrf.mxu0  ;;  %v602_v12 = vpop.f32.mrf.mxu1 }
 0x122   :  { %969 = vst [vmem:[%s1774_s3 + $0xe0] sm:$0xff] %v905_v7  ;;  %1001 = vst [vmem:[%s1774_s3 + $0x1e0] sm:$0xff] %v937_v8  ;;  %v908_v13 = vmax.f32 %v844_v9, 0.0  ;;  %v940_v14 = vmax.f32 %v876_v10, 0.0  ;;  %v843_v15 = vadd.f32 %v1513_v16, %v442_v11  ;;  %v875_v17 = vadd.f32 %v1513_v16, %v602_v12 }
 0x124   :  { %972 = vst [vmem:[%s1774_s3 + $0xf8] sm:$0xff] %v908_v13  ;;  %1004 = vst [vmem:[%s1774_s3 + $0x1f8] sm:$0xff] %v940_v14  ;;  %v907_v18 = vmax.f32 %v843_v15, 0.0  ;;  %v939_v19 = vmax.f32 %v875_v17, 0.0 }
 0x126   :  { %971 = vst [vmem:[%s1774_s3 + $0xf0] sm:$0xff] %v907_v18  ;;  %1003 = vst [vmem:[%s1774_s3 + $0x1f0] sm:$0xff] %v939_v19 }

// kernel: bottleneck_forward.4
= control target key start
LH: loop header
LB: loop body
LE: loop exit
PB: predicated region body
PF: predicated region fallthrough
CT: control target
= control target key end

     0   :  { %s2499_s12 = smov 0   ;;  %s2501_s13 = smov 0   ;;  %s3130_s0 = inlined_call_operand.vmem [shape: f32[2,4,9,9,128], index: 0, kind: input, shape index: {}]   ;;  %s3131_s1 = inlined_call_operand.vmem [shape: f32[9,128,128], index: 1, kind: input, shape index: {}]   ;;  %s3132_s2 = inlined_call_operand.vmem [shape: f32[1,128], index: 2, kind: input, shape index: {}]   ;;  %s3133_s3 = inlined_call_operand.vmem [shape: f32[2,64,128], index: 3, kind: output, shape index: {}]  }
   0x1   :  { %s2503_s14 = smov 0  }
   0x2 LB: > { %s25_s15 = sadd.s32 1, %s2473_s13  ;;  %p1594_p0 = scmp.ge.s32.totalorder %s2477_s14, 1  ;;  %s2477_s14 = sphi %s2503_s14, %s13_s14   ;;  %s2473_s13 = sphi %s2501_s13, %s3145_s13   ;;  %s2469_s12 = sphi %s2499_s12, %s3144_s12  }
   0x3   : > { %p27_p1 = scmp.ge.s32.totalorder %s25_s15, 2  ;;  %p168_p2 = scmp.lt.s32.totalorder %s2477_s14, 3 }
   0x5   : > { %s3147_s15 = smov (%p27_p1, %s25_s15), 0  ;;  %p169_p3 = pnand %p1594_p0, %p168_p2 }
   0x7   : > { %172 = sbr.rel (%p169_p3) target bundleno = 413 (0x19d), region = 32 }
   0xc   : > { %v1621_v0 = vld [vmem:[%s3131_s1 + $0xf8] sm:$0xff]  ;;  %v1620_v2 = vld [vmem:[%s3131_s1 + $0xf0] sm:$0xff]  ;;  %v1619_v4 = vld [vmem:[%s3131_s1 + $0xe8] sm:$0xff]  ;;  %p202_p4 = scmp.lt.s32.totalorder %s2469_s12, 1 }
   0xd   : > { %v245_v1 = vld [vmem:[%s3131_s1 + $0x78] sm:$0xff]  ;;  %2002 = vmatprep.subr.mxu0 %v1621_v0  ;;  %v244_v3 = vld [vmem:[%s3131_s1 + $0x70] sm:$0xff]  ;;  %v243_v5 = vld [vmem:[%s3131_s1 + $0x68] sm:$0xff] }
   0xe   : > { %2046 = vmatprep.subr.mxu1 %v245_v1  ;;  %2003 = vmatpush3.msra.mxu0 %v1621_v0  ;;  %v1618_v6 = vld [vmem:[%s3131_s1 + $0xe0] sm:$0xff]  ;;  %v1617_v8 = vld [vmem:[%s3131_s1 + $0xd8] sm:$0xff]  ;;  %v1616_v10 = vld [vmem:[%s3131_s1 + $0xd0] sm:$0xff]  ;;  %s3149_s12 = smov (!%p202_p4, %s2469_s12), 1 }
   0xf   : > { %2047 = vmatpush3.msra.mxu1 %v245_v1  ;;  %2004 = vmatprep.subr.mxu0 %v1620_v2  ;;  %v242_v7 = vld [vmem:[%s3131_s1 + $0x60] sm:$0xff]  ;;  %v241_v9 = vld [vmem:[%s3131_s1 + $0x58] sm:$0xff]  ;;  %v240_v11 = vld [vmem:[%s3131_s1 + $0x50] sm:$0xff]  ;;  %s2430_s22 = smul.u32 576, %s3149_s12  ;;  %s1785_s20 = sshll.u32 %s3149_s12, 6 }
  0x10   : > { %2048 = vmatprep.subr.mxu1 %v244_v3  ;;  %2005 = vmatpush3.msra.mxu0 %v1620_v2  ;;  %v1615_v12 = vld [vmem:[%s3131_s1 + $0xc8] sm:$0xff]  ;;  %v1614_v14 = vld [vmem:[%s3131_s1 + $0xc0] sm:$0xff]  ;;  %v1613_v16 = vld [vmem:[%s3131_s1 + $0xb8] sm:$0xff]  ;;  %s221_s23 = scalar_lea.vmem %s3133_s3, %s1785_s20 }
  0x11   : > { %2049 = vmatpush3.msra.mxu1 %v244_v3  ;;  %2006 = vmatprep.subr.mxu0 %v1619_v4  ;;  %v239_v13 = vld [vmem:[%s3131_s1 + $0x48] sm:$0xff]  ;;  %v238_v15 = vld [vmem:[%s3131_s1 + $0x40] sm:$0xff]  ;;  %v237_v17 = vld [vmem:[%s3131_s1 + $0x38] sm:$0xff]  ;;  %s2617_s6 = scalar_lea.vmem %s3130_s0, %s2430_s22 }
  0x12   : > { %2050 = vmatprep.subr.mxu1 %v243_v5  ;;  %2007 = vmatpush3.msra.mxu0 %v1619_v4  ;;  %v1612_v18 = vld [vmem:[%s3131_s1 + $0xb0] sm:$0xff]  ;;  %v1611_v20 = vld [vmem:[%s3131_s1 + $0xa8] sm:$0xff]  ;;  %v1610_v22 = vld [vmem:[%s3131_s1 + $0xa0] sm:$0xff] }
  0x13   : > { %2051 = vmatpush3.msra.mxu1 %v243_v5  ;;  %2008 = vmatprep.subr.mxu0 %v1618_v6  ;;  %v236_v19 = vld [vmem:[%s3131_s1 + $0x30] sm:$0xff]  ;;  %v235_v21 = vld [vmem:[%s3131_s1 + $0x28] sm:$0xff]  ;;  %v234_v23 = vld [vmem:[%s3131_s1 + $0x20] sm:$0xff] }
  0x14   : > { %2052 = vmatprep.subr.mxu1 %v242_v7  ;;  %2009 = vmatpush3.msra.mxu0 %v1618_v6  ;;  %v1609_v24 = vld [vmem:[%s3131_s1 + $0x98] sm:$0xff]  ;;  %v1608_v26 = vld [vmem:[%s3131_s1 + $0x90] sm:$0xff]  ;;  %v1607_v28 = vld [vmem:[%s3131_s1 + $0x88] sm:$0xff] }
  0x15   : > { %2053 = vmatpush3.msra.mxu1 %v242_v7  ;;  %2010 = vmatprep.subr.mxu0 %v1617_v8  ;;  %v233_v25 = vld [vmem:[%s3131_s1 + $0x18] sm:$0xff]  ;;  %v232_v27 = vld [vmem:[%s3131_s1 + $0x10] sm:$0xff]  ;;  %v231_v29 = vld [vmem:[%s3131_s1 + $0x8] sm:$0xff] }
  0x16   : > { %2054 = vmatprep.subr.mxu1 %v241_v9  ;;  %2011 = vmatpush3.msra.mxu0 %v1617_v8  ;;  %v1606_v30 = vld [vmem:[%s3131_s1 + $0x80] sm:$0xff]  ;;  %v1598_v32 = vld [vmem:[%s2617_s6 + $0x90] sm:$0xff]  ;;  %v1637_v36 = vld [vmem:[%s3131_s1 + $0x178] sm:$0xff] }
  0x17   : > { %2055 = vmatpush3.msra.mxu1 %v241_v9  ;;  %2012 = vmatprep.subr.mxu0 %v1616_v10  ;;  %v230_v31 = vld [vmem:[%s3131_s1] sm:$0xff]  ;;  %v2631_v35 = vld [vmem:[%s2617_s6 + $0x10] sm:$0xff]  ;;  %v1661_v37 = vld [vmem:[%s3131_s1 + $0x1f8] sm:$0xff] }
  0x18   : > { %2056 = vmatprep.subr.mxu1 %v240_v11  ;;  %2013 = vmatpush3.msra.mxu0 %v1616_v10  ;;  %v222_v33 = vld [vmem:[%s2617_s6] sm:$0xff]  ;;  %v1636_v38 = vld [vmem:[%s3131_s1 + $0x170] sm:$0xff]  ;;  %v1635_v40 = vld [vmem:[%s3131_s1 + $0x168] sm:$0xff] }
  0x19   : > { %2057 = vmatpush3.msra.mxu1 %v240_v11  ;;  %2014 = vmatprep.subr.mxu0 %v1615_v12  ;;  %v2628_v34 = vld [vmem:[%s2617_s6 + $0xa0] sm:$0xff]  ;;  %v1660_v39 = vld [vmem:[%s3131_s1 + $0x1f0] sm:$0xff]  ;;  %v1659_v41 = vld [vmem:[%s3131_s1 + $0x1e8] sm:$0xff] }
  0x1a   : > { %2058 = vmatprep.subr.mxu1 %v239_v13  ;;  %2015 = vmatpush3.msra.mxu0 %v1615_v12  ;;  %v1634_v42 = vld [vmem:[%s3131_s1 + $0x160] sm:$0xff]  ;;  %v1633_v44 = vld [vmem:[%s3131_s1 + $0x158] sm:$0xff]  ;;  %v1632_v46 = vld [vmem:[%s3131_s1 + $0x150] sm:$0xff] }
  0x1b   : > { %2059 = vmatpush3.msra.mxu1 %v239_v13  ;;  %2016 = vmatprep.subr.mxu0 %v1614_v14  ;;  %v1658_v43 = vld [vmem:[%s3131_s1 + $0x1e0] sm:$0xff]  ;;  %v1657_v45 = vld [vmem:[%s3131_s1 + $0x1d8] sm:$0xff]  ;;  %v1656_v47 = vld [vmem:[%s3131_s1 + $0x1d0] sm:$0xff] }
  0x1c   : > { %2060 = vmatprep.subr.mxu1 %v238_v15  ;;  %2017 = vmatpush3.msra.mxu0 %v1614_v14  ;;  %v1631_v48 = vld [vmem:[%s3131_s1 + $0x148] sm:$0xff]  ;;  %v1630_v50 = vld [vmem:[%s3131_s1 + $0x140] sm:$0xff]  ;;  %v1629_v52 = vld [vmem:[%s3131_s1 + $0x138] sm:$0xff] }
  0x1d   : > { %2061 = vmatpush3.msra.mxu1 %v238_v15  ;;  %2018 = vmatprep.subr.mxu0 %v1613_v16  ;;  %v1655_v49 = vld [vmem:[%s3131_s1 + $0x1c8] sm:$0xff]  ;;  %v1654_v51 = vld [vmem:[%s3131_s1 + $0x1c0] sm:$0xff]  ;;  %v1653_v53 = vld [vmem:[%s3131_s1 + $0x1b8] sm:$0xff] }
  0x1e   : > { %2062 = vmatprep.subr.mxu1 %v237_v17  ;;  %2019 = vmatpush3.msra.mxu0 %v1613_v16  ;;  %v2690_v54 = vld [vmem:[%s2617_s6 + $0xb0] sm:$0xff]  ;;  %v2693_v55 = vld [vmem:[%s2617_s6 + $0x20] sm:$0xff]  ;;  %v1627_v60 = vld [vmem:[%s3131_s1 + $0x128] sm:$0xff] }
  0x1f   : > { %2063 = vmatpush3.msra.mxu1 %v237_v17  ;;  %2020 = vmatprep.subr.mxu0 %v1612_v18  ;;  %v1628_v56 = vld [vmem:[%s3131_s1 + $0x130] sm:$0xff]  ;;  %v2702_v58 = vld [vmem:[%s2617_s6 + $0xc0] sm:$0xff]  ;;  %v1651_v61 = vld [vmem:[%s3131_s1 + $0x1a8] sm:$0xff] }
  0x20   : > { %2064 = vmatprep.subr.mxu1 %v236_v19  ;;  %2021 = vmatpush3.msra.mxu0 %v1612_v18  ;;  %v1652_v57 = vld [vmem:[%s3131_s1 + $0x1b0] sm:$0xff]  ;;  %v2721_v63 = vld [vmem:[%s2617_s6 + $0x40] sm:$0xff]  ;;  %v1625_v4 = vld [vmem:[%s3131_s1 + $0x118] sm:$0xff] }
  0x21   : > { %2065 = vmatpush3.msra.mxu1 %v236_v19  ;;  %2022 = vmatprep.subr.mxu0 %v1611_v20  ;;  %v2705_v59 = vld [vmem:[%s2617_s6 + $0x30] sm:$0xff]  ;;  %v1626_v0 = vld [vmem:[%s3131_s1 + $0x120] sm:$0xff]  ;;  %v1649_v5 = vld [vmem:[%s3131_s1 + $0x198] sm:$0xff] }
  0x22   : > { %2066 = vmatprep.subr.mxu1 %v235_v21  ;;  %2023 = vmatpush3.msra.mxu0 %v1611_v20  ;;  %v2718_v62 = vld [vmem:[%s2617_s6 + $0xd0] sm:$0xff]  ;;  %v1650_v1 = vld [vmem:[%s3131_s1 + $0x1a0] sm:$0xff]  ;;  %v1623_v12 = vld [vmem:[%s3131_s1 + $0x108] sm:$0xff] }
  0x23   : > { %2067 = vmatpush3.msra.mxu1 %v235_v21  ;;  %2024 = vmatprep.subr.mxu0 %v1610_v22  ;;  %v2730_v2 = vld [vmem:[%s2617_s6 + $0xe0] sm:$0xff]  ;;  %v2733_v3 = vld [vmem:[%s2617_s6 + $0x50] sm:$0xff]  ;;  %v1647_v13 = vld [vmem:[%s3131_s1 + $0x188] sm:$0xff] }
  0x24   : > { %2068 = vmatprep.subr.mxu1 %v234_v23  ;;  %2025 = vmatpush3.msra.mxu0 %v1610_v22  ;;  %v2746_v6 = vld [vmem:[%s2617_s6 + $0xf0] sm:$0xff]  ;;  %v2749_v7 = vld [vmem:[%s2617_s6 + $0x60] sm:$0xff]  ;;  %v1685_v20 = vld [vmem:[%s3131_s1 + $0x278] sm:$0xff] }
  0x25   : > { %2069 = vmatpush3.msra.mxu1 %v234_v23  ;;  %2026 = vmatprep.subr.mxu0 %v1609_v24  ;;  %v1624_v8 = vld [vmem:[%s3131_s1 + $0x110] sm:$0xff]  ;;  %v2758_v10 = vld [vmem:[%s2617_s6 + $0x100] sm:$0xff]  ;;  %v1709_v21 = vld [vmem:[%s3131_s1 + $0x2f8] sm:$0xff] }
  0x26   : > { %2070 = vmatprep.subr.mxu1 %v233_v25  ;;  %2027 = vmatpush3.msra.mxu0 %v1609_v24  ;;  %v1648_v9 = vld [vmem:[%s3131_s1 + $0x190] sm:$0xff]  ;;  %v1622_v14 = vld [vmem:[%s3131_s1 + $0x100] sm:$0xff] }
  0x27   : > { %2071 = vmatpush3.msra.mxu1 %v233_v25  ;;  %2028 = vmatprep.subr.mxu0 %v1608_v26  ;;  %v2761_v11 = vld [vmem:[%s2617_s6 + $0x70] sm:$0xff]  ;;  %v1646_v15 = vld [vmem:[%s3131_s1 + $0x180] sm:$0xff] }
  0x28   : > { %2072 = vmatprep.subr.mxu1 %v232_v27  ;;  %2029 = vmatpush3.msra.mxu0 %v1608_v26  ;;  %v482_v16 = vld [vmem:[%s2617_s6 + $0x1] sm:$0xff]  ;;  %v2782_v18 = vld [vmem:[%s2617_s6 + $0x11] sm:$0xff] }
  0x29   : > { %2073 = vmatpush3.msra.mxu1 %v232_v27  ;;  %2030 = vmatprep.subr.mxu0 %v1607_v28  ;;  %v1638_v17 = vld [vmem:[%s2617_s6 + $0x120] sm:$0xff]  ;;  %v1639_v19 = vld [vmem:[%s2617_s6 + $0x130] sm:$0xff]  ;;  %v1683_v26 = vld [vmem:[%s3131_s1 + $0x268] sm:$0xff] }
  0x2a   : > { %2074 = vmatprep.subr.mxu1 %v231_v29  ;;  %2031 = vmatpush3.msra.mxu0 %v1607_v28  ;;  %v1684_v22 = vld [vmem:[%s3131_s1 + $0x270] sm:$0xff]  ;;  %v2799_v24 = vld [vmem:[%s2617_s6 + $0x21] sm:$0xff] }
  0x2b   : > { %2075 = vmatpush3.msra.mxu1 %v231_v29  ;;  %2032 = vmatprep.subr.mxu0 %v1606_v30  ;;  %v1708_v23 = vld [vmem:[%s3131_s1 + $0x2f0] sm:$0xff]  ;;  %v1707_v27 = vld [vmem:[%s3131_s1 + $0x2e8] sm:$0xff]  ;;  %v1640_v28 = vld [vmem:[%s2617_s6 + $0x140] sm:$0xff] }
  0x2c   : > { %2076 = vmatprep.subr.mxu1 %v230_v31  ;;  %2033 = vmatpush3.msra.mxu0 %v1606_v30  ;;  %v2802_v25 = vld [vmem:[%s2617_s6 + $0x31] sm:$0xff]  ;;  %v1682_v29 = vld [vmem:[%s3131_s1 + $0x260] sm:$0xff] }
  0x2d   : > { %2034 = vmatprep.mubr.f32.mxu0 %v1598_v32  ;;  %2077 = vmatpush3.msra.mxu1 %v230_v31  ;;  %v1641_v30 = vld [vmem:[%s2617_s6 + $0x150] sm:$0xff]  ;;  %v1706_v31 = vld [vmem:[%s3131_s1 + $0x2e0] sm:$0xff] }
  0x2e   : > { %2078 = vmatprep.mubr.f32.mxu1 %v222_v33  ;;  %2035 = vmatmul.mubr.f32.vlgmr.msra.gmra.mxu0 %v2628_v34  ;;  %v2821_v32 = vld [vmem:[%s2617_s6 + $0x41] sm:$0xff]  ;;  %v2824_v33 = vld [vmem:[%s2617_s6 + $0x51] sm:$0xff] }
  0x2f   : > { %2079 = vmatmul.mubr.f32.vlgmr.msra.gmra.mxu1 %v2631_v35  ;;  %2090 = vmatprep.subr.mxu0 %v1637_v36 }
  0x30   : > { %2134 = vmatprep.subr.mxu1 %v1661_v37  ;;  %2091 = vmatpush3.msra.mxu0 %v1637_v36  ;;  %v1681_v36 = vld [vmem:[%s3131_s1 + $0x258] sm:$0xff] }
  0x31   : > { %2135 = vmatpush3.msra.mxu1 %v1661_v37  ;;  %2092 = vmatprep.subr.mxu0 %v1636_v38  ;;  %v1705_v37 = vld [vmem:[%s3131_s1 + $0x2d8] sm:$0xff] }
  0x32   : > { %2136 = vmatprep.subr.mxu1 %v1660_v39  ;;  %2093 = vmatpush3.msra.mxu0 %v1636_v38  ;;  %v1642_v38 = vld [vmem:[%s2617_s6 + $0x160] sm:$0xff] }
  0x33   : > { %2137 = vmatpush3.msra.mxu1 %v1660_v39  ;;  %2094 = vmatprep.subr.mxu0 %v1635_v40  ;;  %v1680_v39 = vld [vmem:[%s3131_s1 + $0x250] sm:$0xff] }
  0x34   : > { %2138 = vmatprep.subr.mxu1 %v1659_v41  ;;  %2095 = vmatpush3.msra.mxu0 %v1635_v40  ;;  %v1643_v40 = vld [vmem:[%s2617_s6 + $0x170] sm:$0xff] }
  0x35   : > { %2139 = vmatpush3.msra.mxu1 %v1659_v41  ;;  %2096 = vmatprep.subr.mxu0 %v1634_v42  ;;  %v1704_v41 = vld [vmem:[%s3131_s1 + $0x2d0] sm:$0xff] }
  0x36   : > { %2140 = vmatprep.subr.mxu1 %v1658_v43  ;;  %2097 = vmatpush3.msra.mxu0 %v1634_v42  ;;  %v2843_v42 = vld [vmem:[%s2617_s6 + $0x61] sm:$0xff] }
  0x37   : > { %2141 = vmatpush3.msra.mxu1 %v1658_v43  ;;  %2098 = vmatprep.subr.mxu0 %v1633_v44  ;;  %v2846_v43 = vld [vmem:[%s2617_s6 + $0x71] sm:$0xff] }
  0x38   : > { %2142 = vmatprep.subr.mxu1 %v1657_v45  ;;  %2099 = vmatpush3.msra.mxu0 %v1633_v44  ;;  %v1679_v44 = vld [vmem:[%s3131_s1 + $0x248] sm:$0xff] }
  0x39   : > { %2143 = vmatpush3.msra.mxu1 %v1657_v45  ;;  %2100 = vmatprep.subr.mxu0 %v1632_v46  ;;  %v1703_v45 = vld [vmem:[%s3131_s1 + $0x2c8] sm:$0xff] }
  0x3a   : > { %2144 = vmatprep.subr.mxu1 %v1656_v47  ;;  %2101 = vmatpush3.msra.mxu0 %v1632_v46  ;;  %v1644_v46 = vld [vmem:[%s2617_s6 + $0x180] sm:$0xff] }
  0x3b   : > { %2145 = vmatpush3.msra.mxu1 %v1656_v47  ;;  %2102 = vmatprep.subr.mxu0 %v1631_v48  ;;  %v1678_v47 = vld [vmem:[%s3131_s1 + $0x240] sm:$0xff] }
  0x3c   : > { %2146 = vmatprep.subr.mxu1 %v1655_v49  ;;  %2103 = vmatpush3.msra.mxu0 %v1631_v48  ;;  %v1645_v48 = vld [vmem:[%s2617_s6 + $0x190] sm:$0xff] }
  0x3d   : > { %2147 = vmatpush3.msra.mxu1 %v1655_v49  ;;  %2104 = vmatprep.subr.mxu0 %v1630_v50  ;;  %v1702_v49 = vld [vmem:[%s3131_s1 + $0x2c0] sm:$0xff] }
  0x3e   : > { %2148 = vmatprep.subr.mxu1 %v1654_v51  ;;  %2105 = vmatpush3.msra.mxu0 %v1630_v50  ;;  %v1677_v50 = vld [vmem:[%s3131_s1 + $0x238] sm:$0xff] }
  0x3f   : > { %2149 = vmatpush3.msra.mxu1 %v1654_v51  ;;  %2106 = vmatprep.subr.mxu0 %v1629_v52  ;;  %v1701_v51 = vld [vmem:[%s3131_s1 + $0x2b8] sm:$0xff] }
  0x40   : > { %2150 = vmatprep.subr.mxu1 %v1653_v53  ;;  %2107 = vmatpush3.msra.mxu0 %v1629_v52  ;;  %v1676_v52 = vld [vmem:[%s3131_s1 + $0x230] sm:$0xff] }
  0x41   : > { %2151 = vmatpush3.msra.mxu1 %v1653_v53  ;;  %2037 = vmatprep.mubr.f32.mxu0 %v2690_v54  ;;  %v1700_v53 = vld [vmem:[%s3131_s1 + $0x2b0] sm:$0xff] }
  0x42   : > { %2081 = vmatprep.mubr.f32.mxu1 %v2693_v55  ;;  %2108 = vmatprep.subr.mxu0 %v1628_v56 }
  0x43   : > { %2152 = vmatprep.subr.mxu1 %v1652_v57  ;;  %2038 = vmatmul.mubr.f32.gmra.mxu0 %v2702_v58 }
  0x44   : > { %2082 = vmatmul.mubr.f32.gmra.mxu1 %v2705_v59  ;;  %2109 = vmatpush3.msra.mxu0 %v1628_v56  ;;  %v1675_v56 = vld [vmem:[%s3131_s1 + $0x228] sm:$0xff] }
  0x45   : > { %2153 = vmatpush3.msra.mxu1 %v1652_v57  ;;  %2110 = vmatprep.subr.mxu0 %v1627_v60  ;;  %v1699_v57 = vld [vmem:[%s3131_s1 + $0x2a8] sm:$0xff] }
  0x46   : > { %2154 = vmatprep.subr.mxu1 %v1651_v61  ;;  %2111 = vmatpush3.msra.mxu0 %v1627_v60  ;;  %v1674_v60 = vld [vmem:[%s3131_s1 + $0x220] sm:$0xff] }
  0x47   : > { %2155 = vmatpush3.msra.mxu1 %v1651_v61  ;;  %2040 = vmatprep.mubr.f32.mxu0 %v2718_v62  ;;  %v1698_v61 = vld [vmem:[%s3131_s1 + $0x2a0] sm:$0xff] }
  0x48   : > { %2084 = vmatprep.mubr.f32.mxu1 %v2721_v63  ;;  %2112 = vmatprep.subr.mxu0 %v1626_v0 }
  0x49   : > { %2156 = vmatprep.subr.mxu1 %v1650_v1  ;;  %2041 = vmatmul.mubr.f32.gmra.mxu0 %v2730_v2 }
  0x4a   : > { %2085 = vmatmul.mubr.f32.gmra.mxu1 %v2733_v3  ;;  %2113 = vmatpush3.msra.mxu0 %v1626_v0  ;;  %v1673_v0 = vld [vmem:[%s3131_s1 + $0x218] sm:$0xff] }
  0x4b   : > { %2157 = vmatpush3.msra.mxu1 %v1650_v1  ;;  %2114 = vmatprep.subr.mxu0 %v1625_v4  ;;  %v1697_v1 = vld [vmem:[%s3131_s1 + $0x298] sm:$0xff] }
  0x4c   : > { %2158 = vmatprep.subr.mxu1 %v1649_v5  ;;  %2115 = vmatpush3.msra.mxu0 %v1625_v4  ;;  %v1672_v4 = vld [vmem:[%s3131_s1 + $0x210] sm:$0xff] }
  0x4d   : > { %2159 = vmatpush3.msra.mxu1 %v1649_v5  ;;  %2043 = vmatprep.mubr.f32.mxu0 %v2746_v6  ;;  %v1696_v5 = vld [vmem:[%s3131_s1 + $0x290] sm:$0xff] }
  0x4e   : > { %2087 = vmatprep.mubr.f32.mxu1 %v2749_v7  ;;  %2116 = vmatprep.subr.mxu0 %v1624_v8 }
  0x4f   : > { %2160 = vmatprep.subr.mxu1 %v1648_v9  ;;  %2044 = vmatmul.mubr.f32.gmra.mxu0 %v2758_v10 }
  0x50   : > { %2088 = vmatmul.mubr.f32.gmra.mxu1 %v2761_v11  ;;  %2117 = vmatpush3.msra.mxu0 %v1624_v8  ;;  %v1671_v8 = vld [vmem:[%s3131_s1 + $0x208] sm:$0xff] }
  0x51   : > { %2161 = vmatpush3.msra.mxu1 %v1648_v9  ;;  %2118 = vmatprep.subr.mxu0 %v1623_v12  ;;  %v1695_v9 = vld [vmem:[%s3131_s1 + $0x288] sm:$0xff] }
  0x52   : > { %2162 = vmatprep.subr.mxu1 %v1647_v13  ;;  %2119 = vmatpush3.msra.mxu0 %v1623_v12  ;;  %v1670_v12 = vld [vmem:[%s3131_s1 + $0x200] sm:$0xff] }
  0x53   : > { %2163 = vmatpush3.msra.mxu1 %v1647_v13  ;;  %2120 = vmatprep.subr.mxu0 %v1622_v14  ;;  %v1694_v13 = vld [vmem:[%s3131_s1 + $0x280] sm:$0xff] }
  0x54   : > { %2164 = vmatprep.subr.mxu1 %v1646_v15  ;;  %2121 = vmatpush3.msra.mxu0 %v1622_v14  ;;  %v1662_v14 = vld [vmem:[%s2617_s6 + $0x1b0] sm:$0xff] }
  0x55   : > { %2122 = vmatprep.mubr.f32.mxu0 %v482_v16  ;;  %2165 = vmatpush3.msra.mxu1 %v1646_v15  ;;  %v1686_v15 = vld [vmem:[%s2617_s6 + $0x121] sm:$0xff] }
  0x56   : > { %2166 = vmatprep.mubr.f32.mxu1 %v1638_v17  ;;  %2123 = vmatmul.mubr.f32.vlgmr.msra.gmra.mxu0 %v2782_v18  ;;  %v1663_v16 = vld [vmem:[%s2617_s6 + $0x1c0] sm:$0xff]  ;;  %v1687_v17 = vld [vmem:[%s2617_s6 + $0x131] sm:$0xff] }
  0x57   : > { %2167 = vmatmul.mubr.f32.vlgmr.msra.gmra.mxu1 %v1639_v19  ;;  %2178 = vmatprep.subr.mxu0 %v1685_v20  ;;  %v1733_v19 = vld [vmem:[%s3131_s1 + $0x378] sm:$0xff] }
  0x58   : > { %2222 = vmatprep.subr.mxu1 %v1709_v21  ;;  %2179 = vmatpush3.msra.mxu0 %v1685_v20  ;;  %v1757_v20 = vld [vmem:[%s3131_s1 + $0x3f8] sm:$0xff] }
  0x59   : > { %2223 = vmatpush3.msra.mxu1 %v1709_v21  ;;  %2180 = vmatprep.subr.mxu0 %v1684_v22  ;;  %v1732_v21 = vld [vmem:[%s3131_s1 + $0x370] sm:$0xff] }
  0x5a   : > { %2224 = vmatprep.subr.mxu1 %v1708_v23  ;;  %2125 = vmatprep.mubr.f32.mxu0 %v2799_v24 }
  0x5b   : > { %2181 = vmatpush3.msra.mxu0 %v1684_v22  ;;  %2225 = vmatpush3.msra.mxu1 %v1708_v23  ;;  %v1756_v22 = vld [vmem:[%s3131_s1 + $0x3f0] sm:$0xff] }
  0x5c   : > { %2126 = vmatmul.mubr.f32.gmra.mxu0 %v2802_v25  ;;  %2182 = vmatprep.subr.mxu0 %v1683_v26  ;;  %v1664_v23 = vld [vmem:[%s2617_s6 + $0x1d0] sm:$0xff] }
  0x5d   : > { %2226 = vmatprep.subr.mxu1 %v1707_v27  ;;  %2169 = vmatprep.mubr.f32.mxu1 %v1640_v28  ;;  %v1755_v28 = vld [vmem:[%s3131_s1 + $0x3e8] sm:$0xff] }
  0x5e   : > { %2183 = vmatpush3.msra.mxu0 %v1683_v26  ;;  %2227 = vmatpush3.msra.mxu1 %v1707_v27  ;;  %v1665_v26 = vld [vmem:[%s2617_s6 + $0x1e0] sm:$0xff]  ;;  %v1731_v27 = vld [vmem:[%s3131_s1 + $0x368] sm:$0xff] }
  0x5f   : > { %2184 = vmatprep.subr.mxu0 %v1682_v29  ;;  %2170 = vmatmul.mubr.f32.gmra.mxu1 %v1641_v30  ;;  %v1730_v30 = vld [vmem:[%s3131_s1 + $0x360] sm:$0xff] }
  0x60   : > { %2228 = vmatprep.subr.mxu1 %v1706_v31  ;;  %2128 = vmatprep.mubr.f32.mxu0 %v2821_v32 }
  0x61   : > { %2185 = vmatpush3.msra.mxu0 %v1682_v29  ;;  %2229 = vmatpush3.msra.mxu1 %v1706_v31  ;;  %v1688_v29 = vld [vmem:[%s2617_s6 + $0x141] sm:$0xff]  ;;  %v1689_v31 = vld [vmem:[%s2617_s6 + $0x151] sm:$0xff] }
  0x62   : > { %2129 = vmatmul.mubr.f32.gmra.mxu0 %v2824_v33  ;;  %2186 = vmatprep.subr.mxu0 %v1681_v36 }
  0x63   : > { %2230 = vmatprep.subr.mxu1 %v1705_v37  ;;  %2172 = vmatprep.mubr.f32.mxu1 %v1642_v38  ;;  %v1667_v38 = vld [vmem:[%s2617_s6 + $0x200] sm:$0xff] }
  0x64   : > { %2187 = vmatpush3.msra.mxu0 %v1681_v36  ;;  %2231 = vmatpush3.msra.mxu1 %v1705_v37  ;;  %v1754_v36 = vld [vmem:[%s3131_s1 + $0x3e0] sm:$0xff]  ;;  %v1666_v37 = vld [vmem:[%s2617_s6 + $0x1f0] sm:$0xff] }
  0x65   : > { %2188 = vmatprep.subr.mxu0 %v1680_v39  ;;  %2173 = vmatmul.mubr.f32.gmra.mxu1 %v1643_v40  ;;  %v1753_v40 = vld [vmem:[%s3131_s1 + $0x3d8] sm:$0xff] }
  0x66   : > { %2232 = vmatprep.subr.mxu1 %v1704_v41  ;;  %2131 = vmatprep.mubr.f32.mxu0 %v2843_v42 }
  0x67   : > { %2189 = vmatpush3.msra.mxu0 %v1680_v39  ;;  %2233 = vmatpush3.msra.mxu1 %v1704_v41  ;;  %v1729_v39 = vld [vmem:[%s3131_s1 + $0x358] sm:$0xff]  ;;  %v1690_v41 = vld [vmem:[%s2617_s6 + $0x161] sm:$0xff] }
  0x68   : > { %2132 = vmatmul.mubr.f32.gmra.mxu0 %v2846_v43  ;;  %2190 = vmatprep.subr.mxu0 %v1679_v44 }
  0x69   : > { %2234 = vmatprep.subr.mxu1 %v1703_v45  ;;  %2175 = vmatprep.mubr.f32.mxu1 %v1644_v46  ;;  %v1752_v46 = vld [vmem:[%s3131_s1 + $0x3d0] sm:$0xff] }
  0x6a   : > { %2191 = vmatpush3.msra.mxu0 %v1679_v44  ;;  %2235 = vmatpush3.msra.mxu1 %v1703_v45  ;;  %v1728_v44 = vld [vmem:[%s3131_s1 + $0x350] sm:$0xff] }
  0x6b   : > { %2192 = vmatprep.subr.mxu0 %v1678_v47  ;;  %2176 = vmatmul.mubr.f32.gmra.mxu1 %v1645_v48  ;;  %v1691_v45 = vld [vmem:[%s2617_s6 + $0x171] sm:$0xff]  ;;  %v1669_v48 = vld [vmem:[%s2617_s6 + $0x220] sm:$0xff] }
  0x6c   : > { %2236 = vmatprep.subr.mxu1 %v1702_v49  ;;  %2193 = vmatpush3.msra.mxu0 %v1678_v47  ;;  %v1668_v47 = vld [vmem:[%s2617_s6 + $0x210] sm:$0xff] }
  0x6d   : > { %2237 = vmatpush3.msra.mxu1 %v1702_v49  ;;  %2194 = vmatprep.subr.mxu0 %v1677_v50  ;;  %v1727_v49 = vld [vmem:[%s3131_s1 + $0x348] sm:$0xff] }
  0x6e   : > { %2238 = vmatprep.subr.mxu1 %v1701_v51  ;;  %2195 = vmatpush3.msra.mxu0 %v1677_v50  ;;  %v1751_v50 = vld [vmem:[%s3131_s1 + $0x3c8] sm:$0xff] }
  0x6f   : > { %2239 = vmatpush3.msra.mxu1 %v1701_v51  ;;  %2196 = vmatprep.subr.mxu0 %v1676_v52  ;;  %v1692_v51 = vld [vmem:[%s2617_s6 + $0x181] sm:$0xff] }
  0x70   : > { %2240 = vmatprep.subr.mxu1 %v1700_v53  ;;  %2197 = vmatpush3.msra.mxu0 %v1676_v52  ;;  %v1726_v52 = vld [vmem:[%s3131_s1 + $0x340] sm:$0xff] }
  0x71   : > { %2241 = vmatpush3.msra.mxu1 %v1700_v53  ;;  %2198 = vmatprep.subr.mxu0 %v1675_v56  ;;  %v1693_v53 = vld [vmem:[%s2617_s6 + $0x191] sm:$0xff] }
  0x72   : > { %2242 = vmatprep.subr.mxu1 %v1699_v57  ;;  %2199 = vmatpush3.msra.mxu0 %v1675_v56  ;;  %v1750_v56 = vld [vmem:[%s3131_s1 + $0x3c0] sm:$0xff] }
  0x73   : > { %2243 = vmatpush3.msra.mxu1 %v1699_v57  ;;  %2200 = vmatprep.subr.mxu0 %v1674_v60  ;;  %v1725_v57 = vld [vmem:[%s3131_s1 + $0x338] sm:$0xff] }
  0x74   : > { %2244 = vmatprep.subr.mxu1 %v1698_v61  ;;  %2201 = vmatpush3.msra.mxu0 %v1674_v60  ;;  %v1749_v60 = vld [vmem:[%s3131_s1 + $0x3b8] sm:$0xff] }
  0x75   : > { %2245 = vmatpush3.msra.mxu1 %v1698_v61  ;;  %2202 = vmatprep.subr.mxu0 %v1673_v0  ;;  %v1724_v61 = vld [vmem:[%s3131_s1 + $0x330] sm:$0xff] }
  0x76   : > { %2246 = vmatprep.subr.mxu1 %v1697_v1  ;;  %2203 = vmatpush3.msra.mxu0 %v1673_v0  ;;  %v1748_v0 = vld [vmem:[%s3131_s1 + $0x3b0] sm:$0xff] }
  0x77   : > { %2247 = vmatpush3.msra.mxu1 %v1697_v1  ;;  %2204 = vmatprep.subr.mxu0 %v1672_v4  ;;  %v1723_v1 = vld [vmem:[%s3131_s1 + $0x328] sm:$0xff] }
  0x78   : > { %2248 = vmatprep.subr.mxu1 %v1696_v5  ;;  %2205 = vmatpush3.msra.mxu0 %v1672_v4  ;;  %v1747_v4 = vld [vmem:[%s3131_s1 + $0x3a8] sm:$0xff] }
  0x79   : > { %2249 = vmatpush3.msra.mxu1 %v1696_v5  ;;  %2206 = vmatprep.subr.mxu0 %v1671_v8  ;;  %v1722_v5 = vld [vmem:[%s3131_s1 + $0x320] sm:$0xff] }
  0x7a   : > { %2250 = vmatprep.subr.mxu1 %v1695_v9  ;;  %2207 = vmatpush3.msra.mxu0 %v1671_v8  ;;  %v1746_v8 = vld [vmem:[%s3131_s1 + $0x3a0] sm:$0xff] }
  0x7b   : > { %2251 = vmatpush3.msra.mxu1 %v1695_v9  ;;  %2208 = vmatprep.subr.mxu0 %v1670_v12  ;;  %v1721_v9 = vld [vmem:[%s3131_s1 + $0x318] sm:$0xff] }
  0x7c   : > { %2252 = vmatprep.subr.mxu1 %v1694_v13  ;;  %2209 = vmatpush3.msra.mxu0 %v1670_v12  ;;  %v1745_v12 = vld [vmem:[%s3131_s1 + $0x398] sm:$0xff] }
  0x7d   : > { %2210 = vmatprep.mubr.f32.mxu0 %v1662_v14  ;;  %2253 = vmatpush3.msra.mxu1 %v1694_v13  ;;  %v1720_v13 = vld [vmem:[%s3131_s1 + $0x310] sm:$0xff] }
  0x7e   : > { %2254 = vmatprep.mubr.f32.mxu1 %v1686_v15  ;;  %2211 = vmatmul.mubr.f32.vlgmr.msra.gmra.mxu0 %v1663_v16  ;;  %v1744_v14 = vld [vmem:[%s3131_s1 + $0x390] sm:$0xff]  ;;  %v1719_v15 = vld [vmem:[%s3131_s1 + $0x308] sm:$0xff] }
  0x7f   : > { %2255 = vmatmul.mubr.f32.vlgmr.msra.gmra.mxu1 %v1687_v17  ;;  %2266 = vmatprep.subr.mxu0 %v1733_v19  ;;  %v1743_v16 = vld [vmem:[%s3131_s1 + $0x388] sm:$0xff]  ;;  %v1718_v17 = vld [vmem:[%s3131_s1 + $0x300] sm:$0xff] }
  0x80   : > { %2310 = vmatprep.subr.mxu1 %v1757_v20  ;;  %2267 = vmatpush3.msra.mxu0 %v1733_v19  ;;  %v1742_v19 = vld [vmem:[%s3131_s1 + $0x380] sm:$0xff] }
  0x81   : > { %2311 = vmatpush3.msra.mxu1 %v1757_v20  ;;  %2268 = vmatprep.subr.mxu0 %v1732_v21  ;;  %v1781_v20 = vld [vmem:[%s3131_s1 + $0x478] sm:$0xff] }
  0x82   : > { %2312 = vmatprep.subr.mxu1 %v1756_v22  ;;  %2213 = vmatprep.mubr.f32.mxu0 %v1664_v23  ;;  %v1766_v23 = vld [vmem:[%s3131_s1 + $0x400] sm:$0xff] }
  0x83   : > { %2269 = vmatpush3.msra.mxu0 %v1732_v21  ;;  %2313 = vmatpush3.msra.mxu1 %v1756_v22  ;;  %v1780_v21 = vld [vmem:[%s3131_s1 + $0x470] sm:$0xff]  ;;  %v1767_v22 = vld [vmem:[%s3131_s1 + $0x408] sm:$0xff] }
  0x84   : > { %2214 = vmatmul.mubr.f32.gmra.mxu0 %v1665_v26  ;;  %2270 = vmatprep.subr.mxu0 %v1731_v27  ;;  %v1765_v26 = vld [vmem:[%s2617_s6 + $0x81] sm:$0xff] }
  0x85   : > { %2314 = vmatprep.subr.mxu1 %v1755_v28  ;;  %2257 = vmatprep.mubr.f32.mxu1 %v1688_v29 }
  0x86   : > { %2271 = vmatpush3.msra.mxu0 %v1731_v27  ;;  %2315 = vmatpush3.msra.mxu1 %v1755_v28 }
  0x87   : > { %2272 = vmatprep.subr.mxu0 %v1730_v30  ;;  %2258 = vmatmul.mubr.f32.gmra.mxu1 %v1689_v31 }
  0x88   : > { %2316 = vmatprep.subr.mxu1 %v1754_v36  ;;  %2216 = vmatprep.mubr.f32.mxu0 %v1666_v37 }
  0x89   : > { %2273 = vmatpush3.msra.mxu0 %v1730_v30  ;;  %2317 = vmatpush3.msra.mxu1 %v1754_v36 }
  0x8a   : > { %2217 = vmatmul.mubr.f32.gmra.mxu0 %v1667_v38  ;;  %2274 = vmatprep.subr.mxu0 %v1729_v39 }
  0x8b   : > { %2318 = vmatprep.subr.mxu1 %v1753_v40  ;;  %2260 = vmatprep.mubr.f32.mxu1 %v1690_v41 }
  0x8c   : > { %2275 = vmatpush3.msra.mxu0 %v1729_v39  ;;  %2319 = vmatpush3.msra.mxu1 %v1753_v40 }
  0x8d   : > { %2276 = vmatprep.subr.mxu0 %v1728_v44  ;;  %2261 = vmatmul.mubr.f32.gmra.mxu1 %v1691_v45 }
  0x8e   : > { %2320 = vmatprep.subr.mxu1 %v1752_v46  ;;  %2219 = vmatprep.mubr.f32.mxu0 %v1668_v47 }
  0x8f   : > { %2277 = vmatpush3.msra.mxu0 %v1728_v44  ;;  %2321 = vmatpush3.msra.mxu1 %v1752_v46 }
  0x90   : > { %2220 = vmatmul.mubr.f32.gmra.mxu0 %v1669_v48  ;;  %2278 = vmatprep.subr.mxu0 %v1727_v49 }
  0x91   : > { %2322 = vmatprep.subr.mxu1 %v1751_v50  ;;  %2263 = vmatprep.mubr.f32.mxu1 %v1692_v51 }
  0x92   : > { %2279 = vmatpush3.msra.mxu0 %v1727_v49  ;;  %2323 = vmatpush3.msra.mxu1 %v1751_v50 }
  0x93   : > { %2280 = vmatprep.subr.mxu0 %v1726_v52  ;;  %2264 = vmatmul.mubr.f32.gmra.mxu1 %v1693_v53 }
  0x94   : > { %2324 = vmatprep.subr.mxu1 %v1750_v56  ;;  %2281 = vmatpush3.msra.mxu0 %v1726_v52 }
  0x95   : > { %2325 = vmatpush3.msra.mxu1 %v1750_v56  ;;  %2282 = vmatprep.subr.mxu0 %v1725_v57 }
  0x96   : > { %2326 = vmatprep.subr.mxu1 %v1749_v60  ;;  %2283 = vmatpush3.msra.mxu0 %v1725_v57 }
  0x97   : > { %2327 = vmatpush3.msra.mxu1 %v1749_v60  ;;  %2284 = vmatprep.subr.mxu0 %v1724_v61 }
  0x98   : > { %2328 = vmatprep.subr.mxu1 %v1748_v0  ;;  %2285 = vmatpush3.msra.mxu0 %v1724_v61 }
  0x99   : > { %2329 = vmatpush3.msra.mxu1 %v1748_v0  ;;  %2286 = vmatprep.subr.mxu0 %v1723_v1 }
  0x9a   : > { %2330 = vmatprep.subr.mxu1 %v1747_v4  ;;  %2287 = vmatpush3.msra.mxu0 %v1723_v1 }
  0x9b   : > { %2331 = vmatpush3.msra.mxu1 %v1747_v4  ;;  %2288 = vmatprep.subr.mxu0 %v1722_v5 }
  0x9c   : > { %2332 = vmatprep.subr.mxu1 %v1746_v8  ;;  %2289 = vmatpush3.msra.mxu0 %v1722_v5 }
  0x9d   : > { %2333 = vmatpush3.msra.mxu1 %v1746_v8  ;;  %2290 = vmatprep.subr.mxu0 %v1721_v9 }
  0x9e   : > { %2334 = vmatprep.subr.mxu1 %v1745_v12  ;;  %2291 = vmatpush3.msra.mxu0 %v1721_v9 }
  0x9f   : > { %2335 = vmatpush3.msra.mxu1 %v1745_v12  ;;  %2292 = vmatprep.subr.mxu0 %v1720_v13 }
  0xa0   : > { %2336 = vmatprep.subr.mxu1 %v1744_v14  ;;  %2293 = vmatpush3.msra.mxu0 %v1720_v13 }
  0xa1   : > { %2337 = vmatpush3.msra.mxu1 %v1744_v14  ;;  %2294 = vmatprep.subr.mxu0 %v1719_v15 }
  0xa2   : > { %2338 = vmatprep.subr.mxu1 %v1743_v16  ;;  %2295 = vmatpush3.msra.mxu0 %v1719_v15 }
  0xa3   : > { %2339 = vmatpush3.msra.mxu1 %v1743_v16  ;;  %2296 = vmatprep.subr.mxu0 %v1718_v17 }
  0xa4   : > { %2340 = vmatprep.subr.mxu1 %v1742_v19  ;;  %2297 = vmatpush3.msra.mxu0 %v1718_v17 }
  0xa5   : > { %2298 = vmatprep.mubr.f32.mxu0 %v2631_v35  ;;  %2341 = vmatpush3.msra.mxu1 %v1742_v19  ;;  %v1779_v35 = vld [vmem:[%s3131_s1 + $0x468] sm:$0xff] }
  0xa6   : > { %2342 = vmatprep.mubr.f32.mxu1 %v2628_v34  ;;  %2299 = vmatmul.mubr.f32.vlgmr.msra.gmra.mxu0 %v2693_v55  ;;  %v1778_v34 = vld [vmem:[%s3131_s1 + $0x460] sm:$0xff]  ;;  %v1776_v55 = vld [vmem:[%s3131_s1 + $0x450] sm:$0xff] }
  0xa7   : > { %2343 = vmatmul.mubr.f32.vlgmr.msra.gmra.mxu1 %v2690_v54  ;;  %2354 = vmatprep.subr.mxu0 %v1781_v20  ;;  %v1777_v54 = vld [vmem:[%s3131_s1 + $0x458] sm:$0xff] }
  0xa8   : > { %2398 = vmatprep.subr.mxu1 %v1781_v20  ;;  %2355 = vmatpush3.msra.mxu0 %v1781_v20 }
  0xa9   : > { %2414 = vmatpush3.msra.mxu1 %v1781_v20  ;;  %2356 = vmatprep.subr.mxu0 %v1780_v21 }
  0xaa   : > { %2399 = vmatprep.subr.mxu1 %v1780_v21  ;;  %2301 = vmatprep.mubr.f32.mxu0 %v2705_v59  ;;  %v1775_v59 = vld [vmem:[%s3131_s1 + $0x448] sm:$0xff] }
  0xab   : > { %2357 = vmatpush3.msra.mxu0 %v1780_v21  ;;  %2415 = vmatpush3.msra.mxu1 %v1780_v21 }
  0xac   : > { %2302 = vmatmul.mubr.f32.gmra.mxu0 %v2721_v63  ;;  %2358 = vmatprep.subr.mxu0 %v1779_v35  ;;  %v1741_v63 = vld [vmem:[%s2617_s6 + $0x110] sm:$0xff] }
  0xad   : > { %2400 = vmatprep.subr.mxu1 %v1779_v35  ;;  %2345 = vmatprep.mubr.f32.mxu1 %v2702_v58  ;;  %v1717_v58 = vld [vmem:[%s2617_s6 + $0x80] sm:$0xff] }
  0xae   : > { %2359 = vmatpush3.msra.mxu0 %v1779_v35  ;;  %2416 = vmatpush3.msra.mxu1 %v1779_v35 }
  0xaf   : > { %2360 = vmatprep.subr.mxu0 %v1778_v34  ;;  %2346 = vmatmul.mubr.f32.gmra.mxu1 %v2718_v62  ;;  %v1774_v62 = vld [vmem:[%s3131_s1 + $0x440] sm:$0xff] }
  0xb0   : > { %2401 = vmatprep.subr.mxu1 %v1778_v34  ;;  %2304 = vmatprep.mubr.f32.mxu0 %v2733_v3  ;;  %v1772_v3 = vld [vmem:[%s3131_s1 + $0x430] sm:$0xff] }
  0xb1   : > { %2361 = vmatpush3.msra.mxu0 %v1778_v34  ;;  %2417 = vmatpush3.msra.mxu1 %v1778_v34 }
  0xb2   : > { %2305 = vmatmul.mubr.f32.gmra.mxu0 %v2749_v7  ;;  %2362 = vmatprep.subr.mxu0 %v1777_v54  ;;  %v1770_v7 = vld [vmem:[%s3131_s1 + $0x420] sm:$0xff] }
  0xb3   : > { %2402 = vmatprep.subr.mxu1 %v1777_v54  ;;  %2348 = vmatprep.mubr.f32.mxu1 %v2730_v2  ;;  %v1773_v2 = vld [vmem:[%s3131_s1 + $0x438] sm:$0xff] }
  0xb4   : > { %2363 = vmatpush3.msra.mxu0 %v1777_v54  ;;  %2418 = vmatpush3.msra.mxu1 %v1777_v54 }
  0xb5   : > { %2364 = vmatprep.subr.mxu0 %v1776_v55  ;;  %2349 = vmatmul.mubr.f32.gmra.mxu1 %v2746_v6  ;;  %v1771_v6 = vld [vmem:[%s3131_s1 + $0x428] sm:$0xff] }
  0xb6   : > { %2403 = vmatprep.subr.mxu1 %v1776_v55  ;;  %2307 = vmatprep.mubr.f32.mxu0 %v2761_v11  ;;  %v1768_v11 = vld [vmem:[%s3131_s1 + $0x410] sm:$0xff] }
  0xb7   : > { %2365 = vmatpush3.msra.mxu0 %v1776_v55  ;;  %2419 = vmatpush3.msra.mxu1 %v1776_v55 }
  0xb8   : > { %2308 = vmatmul.mubr.f32.gmra.mxu0 %v1717_v58  ;;  %2366 = vmatprep.subr.mxu0 %v1775_v59 }
  0xb9   : > { %2404 = vmatprep.subr.mxu1 %v1775_v59  ;;  %2351 = vmatprep.mubr.f32.mxu1 %v2758_v10  ;;  %v1769_v10 = vld [vmem:[%s3131_s1 + $0x418] sm:$0xff] }
  0xba   : > { %2367 = vmatpush3.msra.mxu0 %v1775_v59  ;;  %2420 = vmatpush3.msra.mxu1 %v1775_v59 }
  0xbb   : > { %2368 = vmatprep.subr.mxu0 %v1774_v62  ;;  %2352 = vmatmul.mubr.f32.gmra.mxu1 %v1741_v63 }
  0xbc   : > { %2405 = vmatprep.subr.mxu1 %v1774_v62  ;;  %2369 = vmatpush3.msra.mxu0 %v1774_v62 }
  0xbd   : > { %2421 = vmatpush3.msra.mxu1 %v1774_v62  ;;  %2370 = vmatprep.subr.mxu0 %v1773_v2 }
  0xbe   : > { %2406 = vmatprep.subr.mxu1 %v1773_v2  ;;  %2371 = vmatpush3.msra.mxu0 %v1773_v2 }
  0xbf   : > { %2422 = vmatpush3.msra.mxu1 %v1773_v2  ;;  %2372 = vmatprep.subr.mxu0 %v1772_v3 }
  0xc0   : > { %2407 = vmatprep.subr.mxu1 %v1772_v3  ;;  %2373 = vmatpush3.msra.mxu0 %v1772_v3 }
  0xc1   : > { %2423 = vmatpush3.msra.mxu1 %v1772_v3  ;;  %2374 = vmatprep.subr.mxu0 %v1771_v6 }
  0xc2   : > { %2408 = vmatprep.subr.mxu1 %v1771_v6  ;;  %2375 = vmatpush3.msra.mxu0 %v1771_v6 }
  0xc3   : > { %2424 = vmatpush3.msra.mxu1 %v1771_v6  ;;  %2376 = vmatprep.subr.mxu0 %v1770_v7 }
  0xc4   : > { %2409 = vmatprep.subr.mxu1 %v1770_v7  ;;  %2377 = vmatpush3.msra.mxu0 %v1770_v7 }
  0xc5   : > { %2425 = vmatpush3.msra.mxu1 %v1770_v7  ;;  %2378 = vmatprep.subr.mxu0 %v1769_v10 }
  0xc6   : > { %2410 = vmatprep.subr.mxu1 %v1769_v10  ;;  %2379 = vmatpush3.msra.mxu0 %v1769_v10 }
  0xc7   : > { %2426 = vmatpush3.msra.mxu1 %v1769_v10  ;;  %2380 = vmatprep.subr.mxu0 %v1768_v11 }
  0xc8   : > { %2411 = vmatprep.subr.mxu1 %v1768_v11  ;;  %2381 = vmatpush3.msra.mxu0 %v1768_v11 }
  0xc9   : > { %2427 = vmatpush3.msra.mxu1 %v1768_v11  ;;  %2382 = vmatprep.subr.mxu0 %v1767_v22 }
  0xca   : > { %2412 = vmatprep.subr.mxu1 %v1767_v22  ;;  %2383 = vmatpush3.msra.mxu0 %v1767_v22 }
  0xcb   : > { %2428 = vmatpush3.msra.mxu1 %v1767_v22  ;;  %2384 = vmatprep.subr.mxu0 %v1766_v23 }
  0xcc   : > { %2413 = vmatprep.subr.mxu1 %v1766_v23  ;;  %2385 = vmatpush3.msra.mxu0 %v1766_v23 }
  0xcd   : > { %2429 = vmatpush3.msra.mxu1 %v1766_v23  ;;  %2386 = vmatprep.mubr.f32.mxu0 %v2782_v18 }
  0xce   : > { %2392 = vmatprep.mubr.f32.mxu1 %v2824_v33  ;;  %2387 = vmatmul.mubr.f32.vlgmr.msra.gmra.mxu0 %v2799_v24 }
  0xcf   : > { %2393 = vmatmul.mubr.f32.vlgmr.msra.gmra.mxu1 %v2843_v42  ;;  %2389 = vmatprep.mubr.f32.mxu0 %v2802_v25 }
  0xd0   : > { %2395 = vmatprep.mubr.f32.mxu1 %v2846_v43 }
  0xd2   : > { %2390 = vmatmul.mubr.f32.gmra.mxu0 %v2821_v32 }
  0xd3   : > { %2396 = vmatmul.mubr.f32.gmra.mxu1 %v1765_v26 }
  0xee   : > { %v2036_v27 = vpop.f32.mrf.mxu0 }
  0xef   : > { %v2080_v30 = vpop.f32.mrf.mxu1 }
  0xf0   : > { %v338_v28 = vpop.f32.mrf.mxu0  ;;  %v449_v63 = vadd.f32 %v2080_v30, %v2036_v27 }
  0xf1   : > { %v443_v31 = vpop.f32.mrf.mxu1 }
  0xf2   : > { %v444_v7 = vadd.f32 %v443_v31, %v338_v28 }
 0x103   : > { %v3096_v29 = vpop.f32.mrf.mxu0 }
 0x104   : > { %v2083_v33 = vpop.f32.mrf.mxu1 }
 0x105   : > { %v348_v18 = vpop.f32.mrf.mxu0 }
 0x106   : > { %v453_v24 = vpop.f32.mrf.mxu1 }
 0x109   : > { %v2042_v36 = vpop.f32.mrf.mxu0 }
 0x10a   : > { %v2086_v42 = vpop.f32.mrf.mxu1 }
 0x10b   : > { %v358_v37 = vpop.f32.mrf.mxu0  ;;  %v469_v2 = vadd.f32 %v2086_v42, %v2042_v36 }
 0x10c   : > { %v463_v25 = vpop.f32.mrf.mxu1 }
 0x10d   : > { %v464_v10 = vadd.f32 %v463_v25, %v358_v37 }
 0x10f   : > { %v2045_v38 = vpop.f32.mrf.mxu0 }
 0x110   : > { %v2089_v43 = vpop.f32.mrf.mxu1 }
 0x111   : > { %v368_v39 = vpop.f32.mrf.mxu0 }
 0x112   : > { %v473_v41 = vpop.f32.mrf.mxu1 }
 0x113   : > { %v474_v27 = vadd.f32 %v473_v41, %v368_v39 }
 0x116   : > { %v2124_v40 = vpop.f32.mrf.mxu0 }
 0x117   : > { %v2168_v44 = vpop.f32.mrf.mxu1  ;;  %v613_v11 = vadd.f32 %v2124_v40, %v449_v63 }
 0x118   : > { %v573_v32 = vpop.f32.mrf.mxu0 }
 0x119   : > { %v712_v46 = vpop.f32.mrf.mxu1  ;;  %v612_v23 = vadd.f32 %v573_v32, %v444_v7  ;;  %v752_v36 = vadd.f32 %v2168_v44, %v613_v11 }
 0x11b   : > { %v751_v37 = vadd.f32 %v712_v46, %v612_v23 }
 0x11c   : > { %v2127_v45 = vpop.f32.mrf.mxu0 }
 0x11e   : > { %v583_v47 = vpop.f32.mrf.mxu0 }
 0x11f   : > { %v2171_v48 = vpop.f32.mrf.mxu1 }
 0x121   : > { %v722_v50 = vpop.f32.mrf.mxu1 }
 0x122   : > { %v2130_v49 = vpop.f32.mrf.mxu0 }
 0x123   : > { %v617_v22 = vadd.f32 %v2130_v49, %v469_v2 }
 0x124   : > { %v593_v51 = vpop.f32.mrf.mxu0 }
 0x125   : > { %v2174_v52 = vpop.f32.mrf.mxu1  ;;  %v616_v26 = vadd.f32 %v593_v51, %v464_v10 }
 0x126   : > { %v756_v42 = vadd.f32 %v2174_v52, %v617_v22 }
 0x127   : > { %v732_v56 = vpop.f32.mrf.mxu1 }
 0x128   : > { %v2133_v53 = vpop.f32.mrf.mxu0  ;;  %v755_v40 = vadd.f32 %v732_v56, %v616_v26 }
 0x12a   : > { %v603_v57 = vpop.f32.mrf.mxu0 }
 0x12b   : > { %v2177_v60 = vpop.f32.mrf.mxu1  ;;  %v618_v25 = vadd.f32 %v603_v57, %v474_v27 }
 0x12d   : > { %v742_v0 = vpop.f32.mrf.mxu1 }
 0x13e   : > { %v2212_v61 = vpop.f32.mrf.mxu0 }
 0x13f   : > { %v2256_v4 = vpop.f32.mrf.mxu1  ;;  %v891_v63 = vadd.f32 %v2212_v61, %v752_v36 }
 0x140   : > { %v851_v1 = vpop.f32.mrf.mxu0 }
 0x141   : > { %v989_v8 = vpop.f32.mrf.mxu1  ;;  %v890_v51 = vadd.f32 %v851_v1, %v751_v37 }
 0x143   : > { %v1028_v46 = vadd.f32 %v989_v8, %v890_v51 }
 0x144   : > { %v2215_v5 = vpop.f32.mrf.mxu0 }
 0x146   : > { %v861_v12 = vpop.f32.mrf.mxu0 }
 0x147   : > { %v3098_v9 = vpop.f32.mrf.mxu1 }
 0x148   : > { %3134 = vst [vmem:[#allocation2_spill] sm:$0xff] %v3098_v9  ;;  %v459_v9 = vadd.f32 %v2083_v33, %v3096_v29  ;;  %v757_v33 = vadd.f32 %v742_v0, %v618_v25 }
 0x149   : > { %v3100_v13 = vpop.f32.mrf.mxu1 }
 0x14a   : > { %3135 = vst [vmem:[#allocation3_spill] sm:$0xff] %v3100_v13  ;;  %v2218_v14 = vpop.f32.mrf.mxu0 }
 0x14b   : > { %v895_v2 = vadd.f32 %v2218_v14, %v756_v42 }
 0x14c   : > { %v871_v16 = vpop.f32.mrf.mxu0 }
 0x14d   : > { %v2262_v15 = vpop.f32.mrf.mxu1  ;;  %v894_v7 = vadd.f32 %v871_v16, %v755_v40 }
 0x14f   : > { %v1009_v17 = vpop.f32.mrf.mxu1 }
 0x150   : > { %v2221_v19 = vpop.f32.mrf.mxu0  ;;  %v1032_v52 = vadd.f32 %v1009_v17, %v894_v7 }
 0x152   : > { %v881_v21 = vpop.f32.mrf.mxu0 }
 0x153   : > { %v2265_v20 = vpop.f32.mrf.mxu1 }
 0x155   : > { %v1019_v34 = vpop.f32.mrf.mxu1 }
 0x166   : > { %v2300_v35 = vpop.f32.mrf.mxu0 }
 0x167   : > { %v2344_v54 = vpop.f32.mrf.mxu1 }
 0x168   : > { %v1128_v55 = vpop.f32.mrf.mxu0 }
 0x169   : > { %v3102_v58 = vpop.f32.mrf.mxu1  ;;  %v1167_v57 = vadd.f32 %v1128_v55, %v1028_v46 }
 0x16a   : > { %3136 = vst [vmem:[#allocation4_spill] sm:$0xff] %v3102_v58  ;;  %v454_v58 = vadd.f32 %v453_v24, %v348_v18  ;;  %v1029_v24 = vadd.f32 %v2256_v4, %v891_v63 }
 0x16c   : > { %v2303_v59 = vpop.f32.mrf.mxu0  ;;  %v614_v28 = vadd.f32 %v583_v47, %v454_v58 }
 0x16e   : > { %v1138_v3 = vpop.f32.mrf.mxu0  ;;  %v753_v29 = vadd.f32 %v722_v50, %v614_v28  ;;  %v3140_v50 = vld [vmem:[#allocation3_spill] sm:$0xff] }
 0x16f   : > { %v3104_v62 = vpop.f32.mrf.mxu1 }
 0x170   : > { %3137 = vst [vmem:[#allocation5_spill] sm:$0xff] %v3104_v62  ;;  %v479_v62 = vadd.f32 %v2089_v43, %v2045_v38  ;;  %v1033_v38 = vadd.f32 %v2262_v15, %v895_v2  ;;  %v892_v41 = vadd.f32 %v861_v12, %v753_v29 }
 0x171   : > { %v3106_v6 = vpop.f32.mrf.mxu1 }
 0x172   : > { %3138 = vst [vmem:[#allocation6_spill] sm:$0xff] %v3106_v6  ;;  %v2306_v13 = vpop.f32.mrf.mxu0  ;;  %v615_v6 = vadd.f32 %v2127_v45, %v459_v9  ;;  %v619_v31 = vadd.f32 %v2133_v53, %v479_v62  ;;  %v896_v45 = vadd.f32 %v881_v21, %v757_v33  ;;  %v1168_v53 = vadd.f32 %v2300_v35, %v1029_v24  ;;  %v3139_v9 = vld [vmem:[#allocation2_spill] sm:$0xff]  ;;  %v3141_v35 = vld [vmem:[#allocation4_spill] sm:$0xff] }
 0x173   : > { %v1172_v56 = vadd.f32 %v2306_v13, %v1033_v38  ;;  %v1782_v13 = vld [vmem:[%s3132_s2] ss:$0 sm:$0xff]  ;;  %v1306_v55 = vadd.f32 %v3141_v35, %v1167_v57 }
 0x174   : > { %v1148_v49 = vpop.f32.mrf.mxu0  ;;  %v754_v10 = vadd.f32 %v2171_v48, %v615_v6  ;;  %v758_v18 = vadd.f32 %v2177_v60, %v619_v31  ;;  %v1030_v60 = vadd.f32 %v3140_v50, %v892_v41  ;;  %v1034_v4 = vadd.f32 %v1019_v34, %v896_v45 }
 0x175   : > { %v2350_v30 = vpop.f32.mrf.mxu1  ;;  %v1171_v61 = vadd.f32 %v1148_v49, %v1032_v52 }
 0x176   : > { %v893_v43 = vadd.f32 %v2215_v5, %v754_v10  ;;  %v897_v44 = vadd.f32 %v2221_v19, %v758_v18  ;;  %v1307_v5 = vadd.f32 %v2344_v54, %v1168_v53  ;;  %v1311_v12 = vadd.f32 %v2350_v30, %v1172_v56 }
 0x177   : > { %v1287_v32 = vpop.f32.mrf.mxu1  ;;  %v1169_v16 = vadd.f32 %v1138_v3, %v1030_v60  ;;  %v3142_v22 = vld [vmem:[#allocation5_spill] sm:$0xff] }
 0x178   : > { %v2309_v39 = vpop.f32.mrf.mxu0  ;;  %v1031_v48 = vadd.f32 %v3139_v9, %v893_v43  ;;  %v1035_v0 = vadd.f32 %v2265_v20, %v897_v44  ;;  %v1310_v58 = vadd.f32 %v1287_v32, %v1171_v61 }
 0x179   : > { %v3143_v26 = vld [vmem:[#allocation6_spill] sm:$0xff] }
 0x17a   : > { %v1158_v1 = vpop.f32.mrf.mxu0  ;;  %v1170_v15 = vadd.f32 %v2303_v59, %v1031_v48  ;;  %v1174_v19 = vadd.f32 %v2309_v39, %v1035_v0  ;;  %v1308_v27 = vadd.f32 %v3143_v26, %v1169_v16 }
 0x17b   : > { %v2353_v47 = vpop.f32.mrf.mxu1  ;;  %v1173_v8 = vadd.f32 %v1158_v1, %v1034_v4 }
 0x17c   : > { %v1309_v23 = vadd.f32 %v3142_v22, %v1170_v15  ;;  %v1313_v30 = vadd.f32 %v2353_v47, %v1174_v19 }
 0x17d   : > { %v1297_v14 = vpop.f32.mrf.mxu1 }
 0x17e   : > { %v1312_v36 = vadd.f32 %v1297_v14, %v1173_v8 }
 0x18e   : > { %v2388_v17 = vpop.f32.mrf.mxu0 }
 0x18f   : > { %v2394_v21 = vpop.f32.mrf.mxu1  ;;  %v1445_v62 = vadd.f32 %v2388_v17, %v1307_v5 }
 0x190   : > { %v1449_v20 = vadd.f32 %v2394_v21, %v1311_v12  ;;  %v1405_v34 = vpop.f32.mrf.mxu0 }
 0x191   : > { %v1425_v6 = vpop.f32.mrf.mxu1  ;;  %v1460_v54 = vadd.f32 %v1782_v13, %v1445_v62  ;;  %v1444_v59 = vadd.f32 %v1405_v34, %v1306_v55 }
 0x192   : > { %v1464_v11 = vadd.f32 %v1782_v13, %v1449_v20  ;;  %v1448_v3 = vadd.f32 %v1425_v6, %v1310_v58  ;;  %v2391_v42 = vpop.f32.mrf.mxu0 }
 0x193   : > { %v2397_v28 = vpop.f32.mrf.mxu1  ;;  %v1468_v31 = vmax.f32 %v1460_v54, 0.0  ;;  %v1459_v37 = vadd.f32 %v1782_v13, %v1444_v59  ;;  %v1447_v63 = vadd.f32 %v2391_v42, %v1309_v23 }
 0x194   : > { %v1472_v25 = vmax.f32 %v1464_v11, 0.0  ;;  %v1463_v40 = vadd.f32 %v1782_v13, %v1448_v3  ;;  %v1451_v2 = vadd.f32 %v2397_v28, %v1313_v30  ;;  %v1415_v49 = vpop.f32.mrf.mxu0 }
 0x195   : > { %v1435_v32 = vpop.f32.mrf.mxu1  ;;  %1476 = vst [vmem:[%s221_s23 + $0x8] sm:$0xff] %v1468_v31  ;;  %v1467_v51 = vmax.f32 %v1459_v37, 0.0  ;;  %v1446_v10 = vadd.f32 %v1415_v49, %v1308_v27  ;;  %v1462_v18 = vadd.f32 %v1782_v13, %v1447_v63 }
 0x196   : > { %1480 = vst [vmem:[%s221_s23 + $0x28] sm:$0xff] %v1472_v25  ;;  %v1471_v7 = vmax.f32 %v1463_v40, 0.0  ;;  %v1450_v29 = vadd.f32 %v1435_v32, %v1312_v36  ;;  %v1466_v33 = vadd.f32 %v1782_v13, %v1451_v2 }
 0x197   : > { %1475 = vst [vmem:[%s221_s23] sm:$0xff] %v1467_v51  ;;  %v1461_v24 = vadd.f32 %v1782_v13, %v1446_v10  ;;  %v1470_v39 = vmax.f32 %v1462_v18, 0.0 }
 0x198   : > { %1479 = vst [vmem:[%s221_s23 + $0x20] sm:$0xff] %v1471_v7  ;;  %v1465_v38 = vadd.f32 %v1782_v13, %v1450_v29  ;;  %v1474_v43 = vmax.f32 %v1466_v33, 0.0 }
 0x199   : > { %v1469_v41 = vmax.f32 %v1461_v24, 0.0  ;;  %1478 = vst [vmem:[%s221_s23 + $0x18] sm:$0xff] %v1470_v39 }
 0x19a   : > { %v1473_v44 = vmax.f32 %v1465_v38, 0.0  ;;  %1482 = vst [vmem:[%s221_s23 + $0x38] sm:$0xff] %v1474_v43 }
 0x19b   : > { %1477 = vst [vmem:[%s221_s23 + $0x10] sm:$0xff] %v1469_v41 }
 0x19c   : > { %1481 = vst [vmem:[%s221_s23 + $0x30] sm:$0xff] %v1473_v44 }
 0x19d PF: > { %s13_s14 = sadd.s32 1, %s2477_s14   ;;  %s3144_s12 = smov %s2473_s13 }
 0x19e   : > { %p10_p5 = scmp.ge.s32.totalorder %s13_s14, 4   ;;  %s3145_s13 = smov %s3147_s15 }
 0x1a0   :  { %12 = sbr.rel (!%p10_p5) target bundleno = 2 (0x2), region = 81 }

// kernel: bottleneck_forward.5
= control target key start
LH: loop header
LB: loop body
LE: loop exit
PB: predicated region body
PF: predicated region fallthrough
CT: control target
= control target key end

     0   :  { %s950_s0 = inlined_call_operand.vmem [shape: f32[128,128], index: 0, kind: input, shape index: {}]   ;;  %s951_s1 = inlined_call_operand.vmem [shape: f32[128,128], index: 1, kind: input, shape index: {}]   ;;  %s952_s2 = inlined_call_operand.vmem [shape: f32[1,128], index: 2, kind: input, shape index: {}]   ;;  %s953_s3 = inlined_call_operand.vmem [shape: f32[128,128], index: 3, kind: input, shape index: {}]   ;;  %s954_s4 = inlined_call_operand.vmem [shape: f32[128,128], index: 4, kind: input, shape index: {}]   ;;  %s955_s5 = inlined_call_operand.vmem [shape: f32[1,128], index: 5, kind: input, shape index: {}]   ;;  %s956_s6 = inlined_call_operand.hbm [shape: f32[128,128], index: 6, kind: output, shape index: {}]  }
   0x1   :  { %v55_v0 = vld [vmem:[%s951_s1 + $0x78] sm:$0xff]  ;;  %v54_v2 = vld [vmem:[%s951_s1 + $0x70] sm:$0xff]  ;;  %v53_v4 = vld [vmem:[%s951_s1 + $0x68] sm:$0xff] }
   0x2   :  { %v239_v1 = vld [vmem:[%s954_s4 + $0x78] sm:$0xff]  ;;  %538 = vmatprep.subr.mxu0 %v55_v0  ;;  %v238_v3 = vld [vmem:[%s954_s4 + $0x70] sm:$0xff]  ;;  %v237_v5 = vld [vmem:[%s954_s4 + $0x68] sm:$0xff] }
   0x3   :  { %594 = vmatprep.subr.mxu1 %v239_v1  ;;  %539 = vmatpush3.msra.mxu0 %v55_v0  ;;  %v52_v6 = vld [vmem:[%s951_s1 + $0x60] sm:$0xff]  ;;  %v51_v8 = vld [vmem:[%s951_s1 + $0x58] sm:$0xff]  ;;  %v50_v10 = vld [vmem:[%s951_s1 + $0x50] sm:$0xff] }
   0x4   :  { %595 = vmatpush3.msra.mxu1 %v239_v1  ;;  %540 = vmatprep.subr.mxu0 %v54_v2  ;;  %v236_v7 = vld [vmem:[%s954_s4 + $0x60] sm:$0xff]  ;;  %v235_v9 = vld [vmem:[%s954_s4 + $0x58] sm:$0xff]  ;;  %v234_v11 = vld [vmem:[%s954_s4 + $0x50] sm:$0xff] }
   0x5   :  { %596 = vmatprep.subr.mxu1 %v238_v3  ;;  %541 = vmatpush3.msra.mxu0 %v54_v2  ;;  %v49_v12 = vld [vmem:[%s951_s1 + $0x48] sm:$0xff]  ;;  %v48_v14 = vld [vmem:[%s951_s1 + $0x40] sm:$0xff]  ;;  %v47_v16 = vld [vmem:[%s951_s1 + $0x38] sm:$0xff] }
   0x6   :  { %597 = vmatpush3.msra.mxu1 %v238_v3  ;;  %542 = vmatprep.subr.mxu0 %v53_v4  ;;  %v233_v13 = vld [vmem:[%s954_s4 + $0x48] sm:$0xff]  ;;  %v232_v15 = vld [vmem:[%s954_s4 + $0x40] sm:$0xff]  ;;  %v231_v17 = vld [vmem:[%s954_s4 + $0x38] sm:$0xff] }
   0x7   :  { %598 = vmatprep.subr.mxu1 %v237_v5  ;;  %543 = vmatpush3.msra.mxu0 %v53_v4  ;;  %v46_v18 = vld [vmem:[%s951_s1 + $0x30] sm:$0xff]  ;;  %v45_v20 = vld [vmem:[%s951_s1 + $0x28] sm:$0xff]  ;;  %v44_v22 = vld [vmem:[%s951_s1 + $0x20] sm:$0xff] }
   0x8   :  { %599 = vmatpush3.msra.mxu1 %v237_v5  ;;  %544 = vmatprep.subr.mxu0 %v52_v6  ;;  %v230_v19 = vld [vmem:[%s954_s4 + $0x30] sm:$0xff]  ;;  %v229_v21 = vld [vmem:[%s954_s4 + $0x28] sm:$0xff]  ;;  %v228_v23 = vld [vmem:[%s954_s4 + $0x20] sm:$0xff] }
   0x9   :  { %600 = vmatprep.subr.mxu1 %v236_v7  ;;  %545 = vmatpush3.msra.mxu0 %v52_v6 }
   0xa   :  { %601 = vmatpush3.msra.mxu1 %v236_v7  ;;  %546 = vmatprep.subr.mxu0 %v51_v8 }
   0xb   :  { %602 = vmatprep.subr.mxu1 %v235_v9  ;;  %547 = vmatpush3.msra.mxu0 %v51_v8 }
   0xc   :  { %603 = vmatpush3.msra.mxu1 %v235_v9  ;;  %548 = vmatprep.subr.mxu0 %v50_v10 }
   0xd   :  { %604 = vmatprep.subr.mxu1 %v234_v11  ;;  %549 = vmatpush3.msra.mxu0 %v50_v10 }
   0xe   :  { %605 = vmatpush3.msra.mxu1 %v234_v11  ;;  %550 = vmatprep.subr.mxu0 %v49_v12 }
   0xf   :  { %606 = vmatprep.subr.mxu1 %v233_v13  ;;  %551 = vmatpush3.msra.mxu0 %v49_v12 }
  0x10   :  { %607 = vmatpush3.msra.mxu1 %v233_v13  ;;  %552 = vmatprep.subr.mxu0 %v48_v14 }
  0x11   :  { %608 = vmatprep.subr.mxu1 %v232_v15  ;;  %553 = vmatpush3.msra.mxu0 %v48_v14 }
  0x12   :  { %609 = vmatpush3.msra.mxu1 %v232_v15  ;;  %554 = vmatprep.subr.mxu0 %v47_v16 }
  0x13   :  { %610 = vmatprep.subr.mxu1 %v231_v17  ;;  %555 = vmatpush3.msra.mxu0 %v47_v16 }
  0x14   :  { %611 = vmatpush3.msra.mxu1 %v231_v17  ;;  %556 = vmatprep.subr.mxu0 %v46_v18 }
  0x15   :  { %612 = vmatprep.subr.mxu1 %v230_v19  ;;  %557 = vmatpush3.msra.mxu0 %v46_v18 }
  0x16   :  { %613 = vmatpush3.msra.mxu1 %v230_v19  ;;  %558 = vmatprep.subr.mxu0 %v45_v20 }
  0x17   :  { %614 = vmatprep.subr.mxu1 %v229_v21 }
  0x18   :  { %11 = vsyncpa [#allocation3], 0  ;;  %559 = vmatpush3.msra.mxu0 %v45_v20  ;;  %615 = vmatpush3.msra.mxu1 %v229_v21  ;;  %v43_v24 = vld [vmem:[%s951_s1 + $0x18] sm:$0xff]  ;;  %v42_v26 = vld [vmem:[%s951_s1 + $0x10] sm:$0xff] }
  0x19   :  { %v227_v25 = vld [vmem:[%s954_s4 + $0x18] sm:$0xff]  ;;  %560 = vmatprep.subr.mxu0 %v44_v22  ;;  %616 = vmatprep.subr.mxu1 %v228_v23  ;;  %v226_v27 = vld [vmem:[%s954_s4 + $0x10] sm:$0xff]  ;;  %v41_v28 = vld [vmem:[%s951_s1 + $0x8] sm:$0xff] }
  0x1a   :  { %561 = vmatpush3.msra.mxu0 %v44_v22  ;;  %617 = vmatpush3.msra.mxu1 %v228_v23  ;;  %v225_v29 = vld [vmem:[%s954_s4 + $0x8] sm:$0xff]  ;;  %v40_v30 = vld [vmem:[%s951_s1] sm:$0xff]  ;;  %v26_v36 = vld [vmem:[%s950_s0 + $0x10] sm:$0xff] }
  0x1b   :  { %562 = vmatprep.subr.mxu0 %v43_v24  ;;  %618 = vmatprep.subr.mxu1 %v227_v25  ;;  %v224_v31 = vld [vmem:[%s954_s4] sm:$0xff]  ;;  %v25_v34 = vld [vmem:[%s950_s0 + $0x8] sm:$0xff]  ;;  %v210_v37 = vld [vmem:[%s953_s3 + $0x10] sm:$0xff] }
  0x1c   :  { %563 = vmatpush3.msra.mxu0 %v43_v24  ;;  %619 = vmatpush3.msra.mxu1 %v227_v25  ;;  %v24_v32 = vld [vmem:[%s950_s0] sm:$0xff]  ;;  %v209_v35 = vld [vmem:[%s953_s3 + $0x8] sm:$0xff]  ;;  %v27_v38 = vld [vmem:[%s950_s0 + $0x18] sm:$0xff] }
  0x1d   :  { %564 = vmatprep.subr.mxu0 %v42_v26  ;;  %620 = vmatprep.subr.mxu1 %v226_v27  ;;  %v208_v33 = vld [vmem:[%s953_s3] sm:$0xff]  ;;  %v211_v39 = vld [vmem:[%s953_s3 + $0x18] sm:$0xff]  ;;  %v29_v42 = vld [vmem:[%s950_s0 + $0x28] sm:$0xff] }
  0x1e   :  { %565 = vmatpush3.msra.mxu0 %v42_v26  ;;  %621 = vmatpush3.msra.mxu1 %v226_v27  ;;  %v28_v40 = vld [vmem:[%s950_s0 + $0x20] sm:$0xff]  ;;  %v213_v43 = vld [vmem:[%s953_s3 + $0x28] sm:$0xff]  ;;  %v30_v44 = vld [vmem:[%s950_s0 + $0x30] sm:$0xff] }
  0x1f   :  { %566 = vmatprep.subr.mxu0 %v41_v28  ;;  %622 = vmatprep.subr.mxu1 %v225_v29  ;;  %v212_v41 = vld [vmem:[%s953_s3 + $0x20] sm:$0xff]  ;;  %v214_v45 = vld [vmem:[%s953_s3 + $0x30] sm:$0xff]  ;;  %v31_v46 = vld [vmem:[%s950_s0 + $0x38] sm:$0xff] }
  0x20   :  { %567 = vmatpush3.msra.mxu0 %v41_v28  ;;  %623 = vmatpush3.msra.mxu1 %v225_v29  ;;  %v215_v47 = vld [vmem:[%s953_s3 + $0x38] sm:$0xff]  ;;  %v32_v48 = vld [vmem:[%s950_s0 + $0x40] sm:$0xff]  ;;  %v33_v50 = vld [vmem:[%s950_s0 + $0x48] sm:$0xff] }
  0x21   :  { %568 = vmatprep.subr.mxu0 %v40_v30  ;;  %624 = vmatprep.subr.mxu1 %v224_v31  ;;  %v216_v49 = vld [vmem:[%s953_s3 + $0x40] sm:$0xff]  ;;  %v217_v51 = vld [vmem:[%s953_s3 + $0x48] sm:$0xff]  ;;  %v34_v52 = vld [vmem:[%s950_s0 + $0x50] sm:$0xff] }
  0x22   :  { %569 = vmatpush3.msra.mxu0 %v40_v30  ;;  %570 = vmatprep.mubr.f32.mxu0 %v24_v32  ;;  %v218_v53 = vld [vmem:[%s953_s3 + $0x50] sm:$0xff]  ;;  %v35_v54 = vld [vmem:[%s950_s0 + $0x58] sm:$0xff]  ;;  %v36_v56 = vld [vmem:[%s950_s0 + $0x60] sm:$0xff] }
  0x23   :  { %625 = vmatpush3.msra.mxu1 %v224_v31  ;;  %626 = vmatprep.mubr.f32.mxu1 %v208_v33  ;;  %v219_v55 = vld [vmem:[%s953_s3 + $0x58] sm:$0xff]  ;;  %v220_v57 = vld [vmem:[%s953_s3 + $0x60] sm:$0xff]  ;;  %v37_v58 = vld [vmem:[%s950_s0 + $0x68] sm:$0xff] }
  0x24   :  { %571 = vmatmul.mubr.f32.vlgmr.msra.gmra.mxu0 %v25_v34  ;;  %627 = vmatmul.mubr.f32.vlgmr.msra.gmra.mxu1 %v209_v35  ;;  %v221_v59 = vld [vmem:[%s953_s3 + $0x68] sm:$0xff]  ;;  %v38_v60 = vld [vmem:[%s950_s0 + $0x70] sm:$0xff]  ;;  %v39_v62 = vld [vmem:[%s950_s0 + $0x78] sm:$0xff]  ;;  %s675_s0 = smov [#allocation2]  }
  0x25   :  { %573 = vmatprep.mubr.f32.mxu0 %v26_v36  ;;  %629 = vmatprep.mubr.f32.mxu1 %v210_v37  ;;  %v222_v61 = vld [vmem:[%s953_s3 + $0x70] sm:$0xff]  ;;  %v223_v63 = vld [vmem:[%s953_s3 + $0x78] sm:$0xff]  ;;  %v908_v0 = vld [vmem:[%s952_s2] ss:$0 sm:$0xff]  ;;  %s461_s2 = sshll.u32 %s675_s0, 4  ;;  %s462_s2 = int_to_ptr.vmem [resolvable:$true] %s461_s2 }
  0x26   :  { %v914_v4 = vld [vmem:[%s955_s5] ss:$0 sm:$0xff]  ;;  %s653_s3 = scalar_lea.vmem %s462_s2, 2048  ;;  %p658_p1 = scmp.lt.s32.totalorder %s462_s2, %s462_s2 }
  0x27   :  { %p654_p0 = scmp.ne.s32.totalorder %s462_s2, %s653_s3  ;;  %p659_p2 = scmp.lt.s32.totalorder %s653_s3, %s653_s3 }
  0x28   :  { %574 = vmatmul.mubr.f32.gmra.mxu0 %v27_v38  ;;  %630 = vmatmul.mubr.f32.gmra.mxu1 %v211_v39 }
  0x29   :  { %576 = vmatprep.mubr.f32.mxu0 %v28_v40  ;;  %632 = vmatprep.mubr.f32.mxu1 %v212_v41  ;;  %p660_p3 = por %p659_p2, %p658_p1 }
  0x2b   :  { %p661_p4 = pnand %p660_p3, %p654_p0 }
  0x2c   :  { %577 = vmatmul.mubr.f32.gmra.mxu0 %v29_v42  ;;  %633 = vmatmul.mubr.f32.gmra.mxu1 %v213_v43 }
  0x2d   :  { %579 = vmatprep.mubr.f32.mxu0 %v30_v44  ;;  %635 = vmatprep.mubr.f32.mxu1 %v214_v45 }
  0x30   :  { %580 = vmatmul.mubr.f32.gmra.mxu0 %v31_v46  ;;  %636 = vmatmul.mubr.f32.gmra.mxu1 %v215_v47 }
  0x31   :  { %582 = vmatprep.mubr.f32.mxu0 %v32_v48  ;;  %638 = vmatprep.mubr.f32.mxu1 %v216_v49 }
  0x34   :  { %583 = vmatmul.mubr.f32.gmra.mxu0 %v33_v50  ;;  %639 = vmatmul.mubr.f32.gmra.mxu1 %v217_v51 }
  0x35   :  { %585 = vmatprep.mubr.f32.mxu0 %v34_v52  ;;  %641 = vmatprep.mubr.f32.mxu1 %v218_v53 }
  0x38   :  { %586 = vmatmul.mubr.f32.gmra.mxu0 %v35_v54  ;;  %642 = vmatmul.mubr.f32.gmra.mxu1 %v219_v55 }
  0x39   :  { %588 = vmatprep.mubr.f32.mxu0 %v36_v56  ;;  %644 = vmatprep.mubr.f32.mxu1 %v220_v57 }
  0x3c   :  { %589 = vmatmul.mubr.f32.gmra.mxu0 %v37_v58  ;;  %645 = vmatmul.mubr.f32.gmra.mxu1 %v221_v59 }
  0x3d   :  { %591 = vmatprep.mubr.f32.mxu0 %v38_v60  ;;  %647 = vmatprep.mubr.f32.mxu1 %v222_v61 }
  0x40   :  { %592 = vmatmul.mubr.f32.gmra.mxu0 %v39_v62  ;;  %648 = vmatmul.mubr.f32.gmra.mxu1 %v223_v63 }
  0xe4   :  { %v572_v1 = vpop.f32.mrf.mxu0  ;;  %v628_v2 = vpop.f32.mrf.mxu1 }
  0xe5   :  { %v135_v3 = vadd.f32 %v572_v1, %v908_v0 }
  0xe6   :  { %v129_v5 = vpop.f32.mrf.mxu0  ;;  %v306_v6 = vpop.f32.mrf.mxu1 }
  0xe7   :  { %v386_v7 = vadd.f32 %v628_v2, %v135_v3  ;;  %v130_v8 = vadd.f32 %v908_v0, %v129_v5 }
  0xe8   :  { %v575_v9 = vpop.f32.mrf.mxu0  ;;  %v631_v10 = vpop.f32.mrf.mxu1 }
  0xe9   :  { %v409_v11 = vadd.f32 %v914_v4, %v386_v7  ;;  %v385_v12 = vadd.f32 %v306_v6, %v130_v8  ;;  %v145_v13 = vadd.f32 %v575_v9, %v908_v0 }
  0xea   :  { %v139_v14 = vpop.f32.mrf.mxu0  ;;  %v316_v15 = vpop.f32.mrf.mxu1 }
  0xeb   :  { %v425_v16 = vmax.f32 %v409_v11, 0.0  ;;  %v408_v17 = vadd.f32 %v914_v4, %v385_v12  ;;  %v388_v18 = vadd.f32 %v631_v10, %v145_v13  ;;  %v140_v19 = vadd.f32 %v908_v0, %v139_v14 }
  0xec   :  { %v578_v20 = vpop.f32.mrf.mxu0  ;;  %v634_v21 = vpop.f32.mrf.mxu1 }
  0xed   :  { %441 = vst [vmem:[#allocation2 + $0x8] sm:$0xff] %v425_v16  ;;  %v424_v22 = vmax.f32 %v408_v17, 0.0  ;;  %v411_v23 = vadd.f32 %v914_v4, %v388_v18  ;;  %v387_v24 = vadd.f32 %v316_v15, %v140_v19  ;;  %v155_v25 = vadd.f32 %v578_v20, %v908_v0 }
  0xee   :  { %v149_v26 = vpop.f32.mrf.mxu0  ;;  %v326_v27 = vpop.f32.mrf.mxu1 }
  0xef   :  { %440 = vst [vmem:[#allocation2] sm:$0xff] %v424_v22  ;;  %v427_v28 = vmax.f32 %v411_v23, 0.0  ;;  %v410_v29 = vadd.f32 %v914_v4, %v387_v24  ;;  %v390_v30 = vadd.f32 %v634_v21, %v155_v25  ;;  %v150_v31 = vadd.f32 %v908_v0, %v149_v26 }
  0xf0   :  { %v581_v32 = vpop.f32.mrf.mxu0  ;;  %v637_v33 = vpop.f32.mrf.mxu1 }
  0xf1   :  { %443 = vst [vmem:[#allocation2 + $0x18] sm:$0xff] %v427_v28  ;;  %v426_v34 = vmax.f32 %v410_v29, 0.0  ;;  %v413_v35 = vadd.f32 %v914_v4, %v390_v30  ;;  %v389_v36 = vadd.f32 %v326_v27, %v150_v31  ;;  %v165_v37 = vadd.f32 %v581_v32, %v908_v0 }
  0xf2   :  { %v159_v38 = vpop.f32.mrf.mxu0  ;;  %v336_v39 = vpop.f32.mrf.mxu1 }
  0xf3   :  { %442 = vst [vmem:[#allocation2 + $0x10] sm:$0xff] %v426_v34  ;;  %v429_v40 = vmax.f32 %v413_v35, 0.0  ;;  %v412_v41 = vadd.f32 %v914_v4, %v389_v36  ;;  %v392_v42 = vadd.f32 %v637_v33, %v165_v37  ;;  %v160_v43 = vadd.f32 %v908_v0, %v159_v38 }
  0xf4   :  { %v584_v44 = vpop.f32.mrf.mxu0  ;;  %v640_v45 = vpop.f32.mrf.mxu1 }
  0xf5   :  { %445 = vst [vmem:[#allocation2 + $0x28] sm:$0xff] %v429_v40  ;;  %v428_v46 = vmax.f32 %v412_v41, 0.0  ;;  %v415_v47 = vadd.f32 %v914_v4, %v392_v42  ;;  %v391_v48 = vadd.f32 %v336_v39, %v160_v43  ;;  %v175_v49 = vadd.f32 %v584_v44, %v908_v0 }
  0xf6   :  { %v169_v50 = vpop.f32.mrf.mxu0  ;;  %v346_v51 = vpop.f32.mrf.mxu1 }
  0xf7   :  { %444 = vst [vmem:[#allocation2 + $0x20] sm:$0xff] %v428_v46  ;;  %v431_v52 = vmax.f32 %v415_v47, 0.0  ;;  %v414_v53 = vadd.f32 %v914_v4, %v391_v48  ;;  %v394_v54 = vadd.f32 %v640_v45, %v175_v49  ;;  %v170_v55 = vadd.f32 %v908_v0, %v169_v50 }
  0xf8   :  { %v587_v56 = vpop.f32.mrf.mxu0  ;;  %v643_v57 = vpop.f32.mrf.mxu1 }
  0xf9   :  { %447 = vst [vmem:[#allocation2 + $0x38] sm:$0xff] %v431_v52  ;;  %v430_v58 = vmax.f32 %v414_v53, 0.0  ;;  %v417_v59 = vadd.f32 %v914_v4, %v394_v54  ;;  %v393_v60 = vadd.f32 %v346_v51, %v170_v55  ;;  %v185_v61 = vadd.f32 %v587_v56, %v908_v0 }
  0xfa   :  { %v179_v62 = vpop.f32.mrf.mxu0  ;;  %v356_v63 = vpop.f32.mrf.mxu1 }
  0xfb   :  { %446 = vst [vmem:[#allocation2 + $0x30] sm:$0xff] %v430_v58  ;;  %v433_v1 = vmax.f32 %v417_v59, 0.0  ;;  %v416_v2 = vadd.f32 %v914_v4, %v393_v60  ;;  %v396_v3 = vadd.f32 %v643_v57, %v185_v61  ;;  %v180_v5 = vadd.f32 %v908_v0, %v179_v62 }
  0xfc   :  { %v590_v6 = vpop.f32.mrf.mxu0  ;;  %v646_v7 = vpop.f32.mrf.mxu1 }
  0xfd   :  { %449 = vst [vmem:[#allocation2 + $0x48] sm:$0xff] %v433_v1  ;;  %v432_v8 = vmax.f32 %v416_v2, 0.0  ;;  %v419_v9 = vadd.f32 %v914_v4, %v396_v3  ;;  %v395_v10 = vadd.f32 %v356_v63, %v180_v5  ;;  %v195_v11 = vadd.f32 %v590_v6, %v908_v0 }
  0xfe   :  { %v189_v12 = vpop.f32.mrf.mxu0  ;;  %v366_v13 = vpop.f32.mrf.mxu1 }
  0xff   :  { %448 = vst [vmem:[#allocation2 + $0x40] sm:$0xff] %v432_v8  ;;  %v435_v14 = vmax.f32 %v419_v9, 0.0  ;;  %v418_v15 = vadd.f32 %v914_v4, %v395_v10  ;;  %v398_v16 = vadd.f32 %v646_v7, %v195_v11  ;;  %v190_v17 = vadd.f32 %v908_v0, %v189_v12 }
 0x100   :  { %v593_v18 = vpop.f32.mrf.mxu0  ;;  %v649_v19 = vpop.f32.mrf.mxu1 }
 0x101   :  { %451 = vst [vmem:[#allocation2 + $0x58] sm:$0xff] %v435_v14  ;;  %v434_v20 = vmax.f32 %v418_v15, 0.0  ;;  %v421_v21 = vadd.f32 %v914_v4, %v398_v16  ;;  %v397_v22 = vadd.f32 %v366_v13, %v190_v17  ;;  %v205_v23 = vadd.f32 %v593_v18, %v908_v0 }
 0x102   :  { %v199_v24 = vpop.f32.mrf.mxu0  ;;  %v376_v29 = vpop.f32.mrf.mxu1 }
 0x103   :  { %450 = vst [vmem:[#allocation2 + $0x50] sm:$0xff] %v434_v20  ;;  %v437_v25 = vmax.f32 %v421_v21, 0.0  ;;  %v420_v26 = vadd.f32 %v914_v4, %v397_v22  ;;  %v400_v27 = vadd.f32 %v649_v19, %v205_v23  ;;  %v200_v28 = vadd.f32 %v908_v0, %v199_v24 }
 0x105   :  { %453 = vst [vmem:[#allocation2 + $0x68] sm:$0xff] %v437_v25  ;;  %v436_v30 = vmax.f32 %v420_v26, 0.0  ;;  %v423_v31 = vadd.f32 %v914_v4, %v400_v27  ;;  %v399_v32 = vadd.f32 %v376_v29, %v200_v28 }
 0x107   :  { %452 = vst [vmem:[#allocation2 + $0x60] sm:$0xff] %v436_v30  ;;  %v439_v33 = vmax.f32 %v423_v31, 0.0  ;;  %v422_v34 = vadd.f32 %v914_v4, %v399_v32 }
 0x109   :  { %455 = vst [vmem:[#allocation2 + $0x78] sm:$0xff] %v439_v33  ;;  %v438_v35 = vmax.f32 %v422_v34, 0.0 }
 0x10b   :  { %454 = vst [vmem:[#allocation2 + $0x70] sm:$0xff] %v438_v35 }
 0x10c   :  { %664 = shalt.err (!%p661_p4)
}
 0x10d   :  { %s676_s5 = smov 128   ;;  %s677_s27 = smov 8  }
 0x10e   :  { %467 = dma.vmem_to_hbm [thread:$0]  %s462_s2, 2048, %s956_s6, [#allocation3], %s676_s5, %s676_s5, %s677_s27  }
 0x10f   :  { %673 = dma.done.wait [#allocation3], 2048  }
 0x110   :  { %674 = vsyncadd [#allocation3], 4294965248 }
 0x111   :  { %471 = vsyncpa [#allocation3], 1 }

</bundles_post_ra>
